<compile_context>
chip_gen: v7x
topology: tpu7x:2x2x1
jax: 0.10.0
libtpu: 0.0.40
codegen_flags: <defaults>
</compile_context>

<pallas_src>
import functools

import jax
import jax.numpy as jnp
from jax.experimental import pallas as pl
from jax.experimental.pallas import tpu as pltpu  # noqa: F401  (TPU backend)


_LANE = 128      # pad feature dims to multiples of this (lane-dense stores)
_SUBLANE = 8     # pad node / graph counts to multiples of this (f32 sublane)


def _round_up(n, m):
    return ((n + m - 1) // m) * m


def _gcn_block_kernel(*refs, num_layers, relu_layers_index):
    # refs = (a, p, x, w0, b0, ..., w_{L-1}, b_{L-1}, emb0, ..., emb_{L-1})
    a_ref, p_ref, x_ref = refs[0], refs[1], refs[2]
    w_refs = refs[3:3 + 2 * num_layers:2]
    b_refs = refs[4:3 + 2 * num_layers:2]
    out_refs = refs[3 + 2 * num_layers:]

    a = a_ref[...]          # (Np, Np) normalized adjacency (self loops included)
    p = p_ref[...]          # (Gp, Np) mean-pool matrix (zero rows for padding)
    h = x_ref[...]          # (Np, D0_pad) node features

    for i in range(num_layers):
        # GCNConv: aggregate(normalized A) of linearly transformed features.
        xw = jnp.dot(h, w_refs[i][...], preferred_element_type=jnp.float32)
        h = jnp.dot(a, xw, preferred_element_type=jnp.float32) + b_refs[i][...]
        if i in relu_layers_index:
            h = jnp.maximum(h, 0.0)
        # dropout with rate 0.0 is the identity -> nothing to do.
        # global mean pool -> this layer's embedding (sublane+lane dense store).
        out_refs[i][...] = jnp.dot(
            p, h, preferred_element_type=jnp.float32
        ).astype(out_refs[i].dtype)


def _normalized_adjacency(edge_index, edge_weight, num_nodes):
    """Dense D^{-1/2} (A + I) D^{-1/2}, matching PyG GCNConv's gcn_norm."""
    src, dst = edge_index[0], edge_index[1]
    a = jnp.zeros((num_nodes, num_nodes), jnp.float32)
    a = a.at[dst, src].add(edge_weight.astype(jnp.float32))   # A[i, j] = w(j->i)
    a = a + jnp.eye(num_nodes, dtype=jnp.float32)             # self loops, weight 1
    deg = a.sum(axis=1)
    dinv = jnp.where(deg > 0, jax.lax.rsqrt(deg), 0.0)
    return a * dinv[:, None] * dinv[None, :]


def _mean_pool_matrix(batch, num_graphs, num_nodes):
    """P[g, n] = 1/|graph g| if batch[n] == g else 0 (global mean pool)."""
    one_hot = (batch[None, :] == jnp.arange(num_graphs)[:, None]).astype(jnp.float32)
    counts = jnp.maximum(one_hot.sum(axis=1, keepdims=True), 1.0)
    return one_hot / counts


@functools.partial(
    jax.jit, static_argnames=("num_graphs", "layer_dims", "relu_idx"))
def _gcn_block_forward(x, edge_index, edge_weight, batch, padded_params, *,
                       num_graphs, layer_dims, relu_idx):
    num_layers = len(layer_dims) - 1
    num_nodes = x.shape[0]

    a_hat = _normalized_adjacency(edge_index, edge_weight, num_nodes)
    pool = _mean_pool_matrix(batch, num_graphs, num_nodes)

    # pad nodes/graphs (sublane) and features (lane); padding is exact (zeros).
    n_pad = _round_up(num_nodes, _SUBLANE)
    g_pad = _round_up(num_graphs, _SUBLANE)
    d0_pad = _round_up(layer_dims[0], _LANE)
    a_p = jnp.zeros((n_pad, n_pad), jnp.float32).at[:num_nodes, :num_nodes].set(a_hat)
    p_p = jnp.zeros((g_pad, n_pad), jnp.float32).at[:num_graphs, :num_nodes].set(pool)
    x_p = jnp.zeros((n_pad, d0_pad), jnp.float32).at[:num_nodes, :x.shape[1]].set(
        x.astype(jnp.float32))

    flat_params = []
    for w_t, b2d in padded_params:
        flat_params.extend((w_t, b2d))

    out_shapes = tuple(
        jax.ShapeDtypeStruct((g_pad, _round_up(d, _LANE)), jnp.float32)
        for d in layer_dims[1:]
    )

    kernel = functools.partial(
        _gcn_block_kernel,
        num_layers=num_layers,
        relu_layers_index=frozenset(relu_idx),
    )
    # Single fused pallas_call: no grid, all (small, padded) operands live in
    # VMEM; all layers + pooling run back-to-back on the MXU/VPU.
    padded_embs = pl.pallas_call(
        kernel,
        out_shape=out_shapes,
    )(a_p, p_p, x_p, *flat_params)

    # slice off the padding -> embeddings with true (num_graphs, feature) dims.
    return [emb[:num_graphs, :d] for emb, d in zip(padded_embs, layer_dims[1:])]


class GCNBlockPallas:
    """JAX/Pallas port of GCNBlock forward (dropout_rate = 0.0)."""

    def __init__(self, gcn_layers_dim, dropout_rate=0.0,
                 relu_layers_index=(), dropout_layers_index=(), key=None):
        assert dropout_rate == 0.0, "non-zero dropout not supported in this kernel"
        if key is None:
            key = jax.random.PRNGKey(0)
        self.gcn_layers_dim = tuple(int(d) for d in gcn_layers_dim)
        self.relu_layers_index = tuple(sorted(set(relu_layers_index)))
        self.dropout_layers_index = tuple(sorted(set(dropout_layers_index)))
        self.num_layers = len(gcn_layers_dim) - 1

        self.params = []          # (W (out,in), b (out,)) -- PyTorch-style layout
        padded = []               # (W^T zero-padded to (Din_p, Dout_p), b (1, Dout_p))
        for i in range(self.num_layers):
            fan_in = self.gcn_layers_dim[i]
            fan_out = self.gcn_layers_dim[i + 1]
            key, kw, kb = jax.random.split(key, 3)
            bound = (6.0 / (fan_in + fan_out)) ** 0.5   # glorot-uniform (PyG default)
            w = jax.random.uniform(kw, (fan_out, fan_in), jnp.float32, -bound, bound)
            b = jax.random.uniform(kb, (fan_out,), jnp.float32, -0.1, 0.1)
            self.params.append((w, b))

            din_p = _round_up(fan_in, _LANE)
            dout_p = _round_up(fan_out, _LANE)
            w_t = jnp.zeros((din_p, dout_p), jnp.float32).at[:fan_in, :fan_out].set(w.T)
            b2d = jnp.zeros((1, dout_p), jnp.float32).at[0, :fan_out].set(b)
            padded.append((w_t, b2d))
        self.padded_params = tuple(padded)

    def __call__(self, x, edge_index, edge_weight, batch, num_graphs):
        return _gcn_block_forward(
            x, edge_index, edge_weight, batch, self.padded_params,
            num_graphs=int(num_graphs),
            layer_dims=self.gcn_layers_dim,
            relu_idx=self.relu_layers_index,
        )


def _reference_forward(block, x, edge_index, edge_weight, batch, num_graphs):
    """Plain-JAX reference of the same dense GCN forward pass."""
    a_hat = _normalized_adjacency(edge_index, edge_weight, x.shape[0])
    pool = _mean_pool_matrix(batch, num_graphs, x.shape[0])
    h = x
    embs = []
    for i, (w, b) in enumerate(block.params):
        h = a_hat @ (h @ w.T) + b
        if i in block.relu_layers_index:
            h = jnp.maximum(h, 0.0)
        embs.append(pool @ h)
    return embs


if __name__ == "__main__":
    jax.config.update("jax_default_matmul_precision", "highest")

    key = jax.random.PRNGKey(0)
    key, kx, kparams, kew = jax.random.split(key, 4)

    # small graph batch: 2 graphs, 12 nodes, feature dims 32 -> 64 -> 48 -> 16
    gcn_layers_dim = [32, 64, 48, 16]
    num_nodes = 12
    num_graphs = 2

    x = jax.random.normal(kx, (num_nodes, gcn_layers_dim[0]), jnp.float32)
    batch = jnp.array([0, 0, 0, 0, 0, 0, 0, 1, 1, 1, 1, 1], jnp.int32)

    # deterministic undirected edges (both directions listed), within each graph
    und = [(0, 1), (1, 2), (2, 3), (3, 4), (4, 5), (5, 6), (6, 0), (1, 4),
           (7, 8), (8, 9), (9, 10), (10, 11), (11, 7), (8, 10)]
    src = [s for s, d in und] + [d for s, d in und]
    dst = [d for s, d in und] + [s for s, d in und]
    edge_index = jnp.array([src, dst], jnp.int32)
    edge_weight = jax.random.uniform(kew, (edge_index.shape[1],), jnp.float32, 0.5, 1.5)

    block = GCNBlockPallas(
        gcn_layers_dim,
        dropout_rate=0.0,
        relu_layers_index=[0, 1],
        dropout_layers_index=[0],
        key=kparams,
    )

    embeddings = block(x, edge_index, edge_weight, batch, num_graphs)
    embeddings = [jax.block_until_ready(e) for e in embeddings]

    ref = _reference_forward(block, x, edge_index, edge_weight, batch, num_graphs)
    for got, want in zip(embeddings, ref):
        assert got.shape == want.shape, (got.shape, want.shape)
        assert jnp.allclose(got, want, atol=2e-3, rtol=2e-3), "mismatch vs reference"

    print("KERNEL_OK")
</pallas_src>

<mosaic_0001>
module attributes {stable_mosaic.version = 11 : i64} {
  func.func @_gcn_block_kernel(%arg0: memref<16x16xf32, #tpu.memory_space<vmem>>, %arg1: memref<8x16xf32, #tpu.memory_space<vmem>>, %arg2: memref<16x128xf32, #tpu.memory_space<vmem>>, %arg3: memref<128x128xf32, #tpu.memory_space<vmem>>, %arg4: memref<1x128xf32, #tpu.memory_space<vmem>>, %arg5: memref<128x128xf32, #tpu.memory_space<vmem>>, %arg6: memref<1x128xf32, #tpu.memory_space<vmem>>, %arg7: memref<128x128xf32, #tpu.memory_space<vmem>>, %arg8: memref<1x128xf32, #tpu.memory_space<vmem>>, %arg9: memref<8x128xf32, #tpu.memory_space<vmem>>, %arg10: memref<8x128xf32, #tpu.memory_space<vmem>>, %arg11: memref<8x128xf32, #tpu.memory_space<vmem>>) attributes {dimension_semantics = [], scalar_prefetch = 0 : i64, scratch_operands = 0 : i64, tpu.core_type = #tpu.core_type<tc>} {
    %c0 = arith.constant 0 : index
    %c0_0 = arith.constant 0 : index
    %0 = vector.load %arg0[%c0, %c0_0] : memref<16x16xf32, #tpu.memory_space<vmem>>, vector<16x16xf32>
    %c0_1 = arith.constant 0 : index
    %c0_2 = arith.constant 0 : index
    %1 = vector.load %arg1[%c0_1, %c0_2] : memref<8x16xf32, #tpu.memory_space<vmem>>, vector<8x16xf32>
    %c0_3 = arith.constant 0 : index
    %c0_4 = arith.constant 0 : index
    %2 = vector.load %arg2[%c0_3, %c0_4] : memref<16x128xf32, #tpu.memory_space<vmem>>, vector<16x128xf32>
    %c0_5 = arith.constant 0 : index
    %c0_6 = arith.constant 0 : index
    %3 = vector.load %arg3[%c0_5, %c0_6] : memref<128x128xf32, #tpu.memory_space<vmem>>, vector<128x128xf32>
    %cst = arith.constant dense<0.000000e+00> : vector<16x128xf32>
    %4 = tpu.matmul %2, %3, %cst {dimension_numbers = #tpu.dot_dimension_numbers<[1], [0], [0], [1], [0, 0, 1, 1], [], []>, precision = #tpu.contract_precision<fp32>} : vector<16x128xf32>, vector<128x128xf32>, vector<16x128xf32> -> vector<16x128xf32>
    %cst_7 = arith.constant dense<0.000000e+00> : vector<16x128xf32>
    %5 = tpu.matmul %0, %4, %cst_7 {dimension_numbers = #tpu.dot_dimension_numbers<[1], [0], [0], [1], [0, 0, 1, 1], [], []>, precision = #tpu.contract_precision<fp32>} : vector<16x16xf32>, vector<16x128xf32>, vector<16x128xf32> -> vector<16x128xf32>
    %c0_8 = arith.constant 0 : index
    %c0_9 = arith.constant 0 : index
    %6 = vector.load %arg4[%c0_8, %c0_9] : memref<1x128xf32, #tpu.memory_space<vmem>>, vector<1x128xf32>
    %7 = vector.broadcast %6 : vector<1x128xf32> to vector<16x128xf32>
    %8 = arith.addf %5, %7 : vector<16x128xf32>
    %cst_10 = arith.constant 0.000000e+00 : f32
    %9 = vector.broadcast %cst_10 : f32 to vector<16x128xf32>
    %10 = arith.maximumf %8, %9 : vector<16x128xf32>
    %cst_11 = arith.constant dense<0.000000e+00> : vector<8x128xf32>
    %11 = tpu.matmul %1, %10, %cst_11 {dimension_numbers = #tpu.dot_dimension_numbers<[1], [0], [0], [1], [0, 0, 1, 1], [], []>, precision = #tpu.contract_precision<fp32>} : vector<8x16xf32>, vector<16x128xf32>, vector<8x128xf32> -> vector<8x128xf32>
    %c0_12 = arith.constant 0 : index
    %c0_13 = arith.constant 0 : index
    %12 = vector.load %arg9[%c0_12, %c0_13] : memref<8x128xf32, #tpu.memory_space<vmem>>, vector<8x128xf32>
    tpu.vector_store %arg9[%c0_12, %c0_13], %11 {strides = array<i32>} : memref<8x128xf32, #tpu.memory_space<vmem>>, vector<8x128xf32>,
    %c0_14 = arith.constant 0 : index
    %c0_15 = arith.constant 0 : index
    %13 = vector.load %arg5[%c0_14, %c0_15] : memref<128x128xf32, #tpu.memory_space<vmem>>, vector<128x128xf32>
    %cst_16 = arith.constant dense<0.000000e+00> : vector<16x128xf32>
    %14 = tpu.matmul %10, %13, %cst_16 {dimension_numbers = #tpu.dot_dimension_numbers<[1], [0], [0], [1], [0, 0, 1, 1], [], []>, precision = #tpu.contract_precision<fp32>} : vector<16x128xf32>, vector<128x128xf32>, vector<16x128xf32> -> vector<16x128xf32>
    %cst_17 = arith.constant dense<0.000000e+00> : vector<16x128xf32>
    %15 = tpu.matmul %0, %14, %cst_17 {dimension_numbers = #tpu.dot_dimension_numbers<[1], [0], [0], [1], [0, 0, 1, 1], [], []>, precision = #tpu.contract_precision<fp32>} : vector<16x16xf32>, vector<16x128xf32>, vector<16x128xf32> -> vector<16x128xf32>
    %c0_18 = arith.constant 0 : index
    %c0_19 = arith.constant 0 : index
    %16 = vector.load %arg6[%c0_18, %c0_19] : memref<1x128xf32, #tpu.memory_space<vmem>>, vector<1x128xf32>
    %17 = vector.broadcast %16 : vector<1x128xf32> to vector<16x128xf32>
    %18 = arith.addf %15, %17 : vector<16x128xf32>
    %cst_20 = arith.constant 0.000000e+00 : f32
    %19 = vector.broadcast %cst_20 : f32 to vector<16x128xf32>
    %20 = arith.maximumf %18, %19 : vector<16x128xf32>
    %cst_21 = arith.constant dense<0.000000e+00> : vector<8x128xf32>
    %21 = tpu.matmul %1, %20, %cst_21 {dimension_numbers = #tpu.dot_dimension_numbers<[1], [0], [0], [1], [0, 0, 1, 1], [], []>, precision = #tpu.contract_precision<fp32>} : vector<8x16xf32>, vector<16x128xf32>, vector<8x128xf32> -> vector<8x128xf32>
    %c0_22 = arith.constant 0 : index
    %c0_23 = arith.constant 0 : index
    %22 = vector.load %arg10[%c0_22, %c0_23] : memref<8x128xf32, #tpu.memory_space<vmem>>, vector<8x128xf32>
    tpu.vector_store %arg10[%c0_22, %c0_23], %21 {strides = array<i32>} : memref<8x128xf32, #tpu.memory_space<vmem>>, vector<8x128xf32>,
    %c0_24 = arith.constant 0 : index
    %c0_25 = arith.constant 0 : index
    %23 = vector.load %arg7[%c0_24, %c0_25] : memref<128x128xf32, #tpu.memory_space<vmem>>, vector<128x128xf32>
    %cst_26 = arith.constant dense<0.000000e+00> : vector<16x128xf32>
    %24 = tpu.matmul %20, %23, %cst_26 {dimension_numbers = #tpu.dot_dimension_numbers<[1], [0], [0], [1], [0, 0, 1, 1], [], []>, precision = #tpu.contract_precision<fp32>} : vector<16x128xf32>, vector<128x128xf32>, vector<16x128xf32> -> vector<16x128xf32>
    %cst_27 = arith.constant dense<0.000000e+00> : vector<16x128xf32>
    %25 = tpu.matmul %0, %24, %cst_27 {dimension_numbers = #tpu.dot_dimension_numbers<[1], [0], [0], [1], [0, 0, 1, 1], [], []>, precision = #tpu.contract_precision<fp32>} : vector<16x16xf32>, vector<16x128xf32>, vector<16x128xf32> -> vector<16x128xf32>
    %c0_28 = arith.constant 0 : index
    %c0_29 = arith.constant 0 : index
    %26 = vector.load %arg8[%c0_28, %c0_29] : memref<1x128xf32, #tpu.memory_space<vmem>>, vector<1x128xf32>
    %27 = vector.broadcast %26 : vector<1x128xf32> to vector<16x128xf32>
    %28 = arith.addf %25, %27 : vector<16x128xf32>
    %cst_30 = arith.constant dense<0.000000e+00> : vector<8x128xf32>
    %29 = tpu.matmul %1, %28, %cst_30 {dimension_numbers = #tpu.dot_dimension_numbers<[1], [0], [0], [1], [0, 0, 1, 1], [], []>, precision = #tpu.contract_precision<fp32>} : vector<8x16xf32>, vector<16x128xf32>, vector<8x128xf32> -> vector<8x128xf32>
    %c0_31 = arith.constant 0 : index
    %c0_32 = arith.constant 0 : index
    %30 = vector.load %arg11[%c0_31, %c0_32] : memref<8x128xf32, #tpu.memory_space<vmem>>, vector<8x128xf32>
    tpu.vector_store %arg11[%c0_31, %c0_32], %29 {strides = array<i32>} : memref<8x128xf32, #tpu.memory_space<vmem>>, vector<8x128xf32>,
    return
  }
}

</mosaic_0001>

<bundles_post_ra>
// kernel: _gcn_block_forward.1
= control target key start
LH: loop header
LB: loop body
LE: loop exit
PB: predicated region body
PF: predicated region fallthrough
CT: control target
= control target key end

     0   :  { %vm747_vm0 = vcmask 130048   ;;  %vm7210_vm1 = vmmov 0   ;;  %s8382_s3 = inlined_call_operand.vmem [shape: f32[128,128], index: 3, kind: input, shape index: {}]   ;;  %s8383_s2 = inlined_call_operand.vmem [shape: f32[16,128], index: 2, kind: input, shape index: {}]   ;;  %s8384_s0 = inlined_call_operand.vmem [shape: f32[16,16], index: 0, kind: input, shape index: {}]   ;;  %s8385_s1 = inlined_call_operand.vmem [shape: f32[8,16], index: 1, kind: input, shape index: {}]   ;;  %s8386_s4 = inlined_call_operand.vmem [shape: f32[1,128], index: 4, kind: input, shape index: {}]   ;;  %s8387_s5 = inlined_call_operand.vmem [shape: f32[128,128], index: 5, kind: input, shape index: {}]   ;;  %s8388_s9 = inlined_call_operand.vmem [shape: f32[8,128], index: 9, kind: output, shape index: {0}]   ;;  %s8389_s6 = inlined_call_operand.vmem [shape: f32[1,128], index: 6, kind: input, shape index: {}]   ;;  %s8390_s7 = inlined_call_operand.vmem [shape: f32[128,128], index: 7, kind: input, shape index: {}]   ;;  %s8391_s10 = inlined_call_operand.vmem [shape: f32[8,128], index: 10, kind: output, shape index: {1}]   ;;  %s8392_s8 = inlined_call_operand.vmem [shape: f32[1,128], index: 8, kind: input, shape index: {}]   ;;  %s8393_s11 = inlined_call_operand.vmem [shape: f32[8,128], index: 11, kind: output, shape index: {2}]  }
   0x1   :  { %v40_v0 = vld [vmem:[%s8382_s3] sm:$0xff]  ;;  %v41_v1 = vld [vmem:[%s8382_s3 + $0x8] sm:$0xff]  ;;  %v42_v2 = vld [vmem:[%s8382_s3 + $0x10] sm:$0xff] }
   0x2   :  { %v57_v3 = vand.u32 4294901760, %v40_v0  ;;  %v60_v4 = vand.u32 4294901760, %v41_v1  ;;  %v43_v5 = vld [vmem:[%s8382_s3 + $0x18] sm:$0xff]  ;;  %v63_v6 = vand.u32 4294901760, %v42_v2  ;;  %v44_v7 = vld [vmem:[%s8382_s3 + $0x20] sm:$0xff]  ;;  %v45_v8 = vld [vmem:[%s8382_s3 + $0x28] sm:$0xff] }
   0x3   :  { %v66_v9 = vand.u32 4294901760, %v43_v5  ;;  %v69_v10 = vand.u32 4294901760, %v44_v7  ;;  %v72_v11 = vand.u32 4294901760, %v45_v8  ;;  %v46_v12 = vld [vmem:[%s8382_s3 + $0x30] sm:$0xff]  ;;  %v47_v13 = vld [vmem:[%s8382_s3 + $0x38] sm:$0xff]  ;;  %v48_v25 = vld [vmem:[%s8382_s3 + $0x40] sm:$0xff] }
   0x4   :  { %v7296_v14 = vpack.c.bf16 %v60_v4, %v57_v3  ;;  %v7298_v15 = vsub.f32 %v40_v0, %v57_v3  ;;  %v7300_v16 = vsub.f32 %v41_v1, %v60_v4  ;;  %v7302_v17 = vsub.f32 %v42_v2, %v63_v6  ;;  %v49_v27 = vld [vmem:[%s8382_s3 + $0x48] sm:$0xff]  ;;  %v50_v34 = vld [vmem:[%s8382_s3 + $0x50] sm:$0xff]  ;;  %v38_v35 = vld [vmem:[%s8383_s2] sm:$0xff] }
   0x5   :  { %v7304_v18 = vpack.c.bf16 %v66_v9, %v63_v6  ;;  %v7306_v19 = vsub.f32 %v43_v5, %v66_v9  ;;  %v7308_v20 = vsub.f32 %v44_v7, %v69_v10  ;;  %v7312_v22 = vsub.f32 %v45_v8, %v72_v11  ;;  %v51_v36 = vld [vmem:[%s8382_s3 + $0x58] sm:$0xff]  ;;  %v52_v44 = vld [vmem:[%s8382_s3 + $0x60] sm:$0xff]  ;;  %v53_v45 = vld [vmem:[%s8382_s3 + $0x68] sm:$0xff] }
   0x6   :  { %v6472_v21 = vpack.c.bf16 %v7300_v16, %v7298_v15  ;;  %v75_v23 = vand.u32 4294901760, %v46_v12  ;;  %v78_v24 = vand.u32 4294901760, %v47_v13  ;;  %6409 = vmatprep.subr.bf16.mxu1 %v7296_v14  ;;  %v7324_v28 = vpack.c.bf16 %v72_v11, %v69_v10  ;;  %v39_v49 = vld [vmem:[%s8383_s2 + $0x8] sm:$0xff]  ;;  %v54_v55 = vld [vmem:[%s8382_s3 + $0x70] sm:$0xff]  ;;  %v55_v56 = vld [vmem:[%s8382_s3 + $0x78] sm:$0xff] }
   0x7   :  { %v6476_v26 = vpack.c.bf16 %v7306_v19, %v7302_v17  ;;  %6411 = vmatpush3.bf16.msra.mxu1 %v7296_v14  ;;  %v81_v29 = vand.u32 4294901760, %v48_v25  ;;  %v6480_v30 = vpack.c.bf16 %v7312_v22, %v7308_v20  ;;  %v84_v33 = vand.u32 4294901760, %v49_v27 }
   0x8   :  { %6473 = vmatprep.subr.bf16.mxu0 %v6472_v21  ;;  %6413 = vmatprep.subr.bf16.mxu1 %v7304_v18  ;;  %v7329_v31 = vsub.f32 %v46_v12, %v75_v23  ;;  %v7331_v32 = vsub.f32 %v47_v13, %v78_v24  ;;  %v7343_v37 = vpack.c.bf16 %v78_v24, %v75_v23  ;;  %v87_v38 = vand.u32 4294901760, %v50_v34 }
   0x9   :  { %6475 = vmatpush3.bf16.msra.mxu0 %v6472_v21  ;;  %v7346_v39 = vand.u32 4294901760, %v38_v35  ;;  %v7350_v41 = vsub.f32 %v48_v25, %v81_v29  ;;  %v7352_v42 = vsub.f32 %v49_v27, %v84_v33  ;;  %v90_v43 = vand.u32 4294901760, %v51_v36 }
   0xa   :  { %6477 = vmatprep.subr.bf16.mxu0 %v6476_v26  ;;  %v6484_v40 = vpack.c.bf16 %v7331_v32, %v7329_v31  ;;  %v7364_v47 = vpack.c.bf16 %v84_v33, %v81_v29  ;;  %v7367_v48 = vsub.f32 %v50_v34, %v87_v38  ;;  %v93_v53 = vand.u32 4294901760, %v52_v44 }
   0xb   :  { %6415 = vmatpush3.bf16.msra.mxu1 %v7304_v18  ;;  %v7361_v46 = vsub.f32 %v38_v35, %v7346_v39  ;;  %v6488_v51 = vpack.c.bf16 %v7352_v42, %v7350_v41  ;;  %v7376_v52 = vsub.f32 %v51_v36, %v90_v43  ;;  %v96_v54 = vand.u32 4294901760, %v53_v45 }
   0xc   :  { %6417 = vmatprep.subr.bf16.mxu1 %v7324_v28  ;;  %v7388_v58 = vpack.c.bf16 %v90_v43, %v87_v38  ;;  %v7390_v59 = vand.u32 4294901760, %v39_v49  ;;  %v160_v60 = vand.u32 4294901760, %v7298_v15  ;;  %v167_v61 = vand.u32 4294901760, %v7300_v16 }
   0xd   :  { %6479 = vmatpush3.bf16.msra.mxu0 %v6476_v26  ;;  %5628 = vmatprep.mubr.f32.mxu0 %v7361_v46  ;;  %v139_v50 = vand.u32 4294901760, %v7361_v46  ;;  %v99_v62 = vand.u32 4294901760, %v54_v55  ;;  %v6492_v0 = vpack.c.bf16 %v7376_v52, %v7367_v48  ;;  %v7397_v1 = vsub.f32 %v52_v44, %v93_v53 }
   0xe   :  { %6481 = vmatprep.subr.bf16.mxu0 %v6480_v30  ;;  %v7399_v2 = vsub.f32 %v53_v45, %v96_v54  ;;  %v102_v3 = vand.u32 4294901760, %v55_v56  ;;  %v174_v4 = vand.u32 4294901760, %v7302_v17  ;;  %v181_v5 = vand.u32 4294901760, %v7306_v19 }
   0xf   :  { %6419 = vmatpush3.bf16.msra.mxu1 %v7324_v28  ;;  %v140_v57 = vsub.f32 %v7361_v46, %v139_v50  ;;  %v7404_v6 = vpack.c.bf16 %v96_v54, %v93_v53  ;;  %v7407_v7 = vsub.f32 %v39_v49, %v7390_v59  ;;  %v161_v8 = vsub.f32 %v7298_v15, %v160_v60 }
  0x10   :  { %6421 = vmatprep.subr.bf16.mxu1 %v7343_v37  ;;  %v168_v9 = vsub.f32 %v7300_v16, %v167_v61  ;;  %v6496_v10 = vpack.c.bf16 %v7399_v2, %v7397_v1  ;;  %v7418_v11 = vsub.f32 %v54_v55, %v99_v62  ;;  %v7420_v12 = vsub.f32 %v55_v56, %v102_v3 }
  0x11   :  { %6483 = vmatpush3.bf16.msra.mxu0 %v6480_v30  ;;  %v141_v63 = vand.u32 4294901760, %v140_v57  ;;  %v149_v13 = vand.u32 4294901760, %v7407_v7  ;;  %v175_v21 = vsub.f32 %v7302_v17, %v174_v4  ;;  %v182_v23 = vsub.f32 %v7306_v19, %v181_v5 }
  0x12   :  { %6485 = vmatprep.subr.bf16.mxu0 %v6484_v40  ;;  %v188_v24 = vand.u32 4294901760, %v7308_v20  ;;  %v7431_v25 = vpack.c.bf16 %v102_v3, %v99_v62  ;;  %v162_v26 = vand.u32 4294901760, %v161_v8  ;;  %v169_v27 = vand.u32 4294901760, %v168_v9 }
  0x13   :  { %6423 = vmatpush3.bf16.msra.mxu1 %v7343_v37  ;;  %5558 = vmatprep.mubr.f32.mxu1 %v141_v63  ;;  %v195_v29 = vand.u32 4294901760, %v7312_v22  ;;  %v6500_v30 = vpack.c.bf16 %v7420_v12, %v7418_v11  ;;  %v150_v33 = vsub.f32 %v7407_v7, %v149_v13  ;;  %v176_v34 = vand.u32 4294901760, %v175_v21 }
  0x14   :  { %6425 = vmatprep.subr.bf16.mxu1 %v7364_v47  ;;  %v183_v35 = vand.u32 4294901760, %v182_v23  ;;  %v189_v36 = vsub.f32 %v7308_v20, %v188_v24  ;;  %v202_v38 = vand.u32 4294901760, %v7329_v31  ;;  %v209_v44 = vand.u32 4294901760, %v7331_v32 }
  0x15   :  { %6487 = vmatpush3.bf16.msra.mxu0 %v6484_v40  ;;  %v6440_v40 = vpack.c.bf16 %v169_v27, %v162_v26  ;;  %v196_v43 = vsub.f32 %v7312_v22, %v195_v29  ;;  %v151_v45 = vand.u32 4294901760, %v150_v33  ;;  %v216_v56 = vand.u32 4294901760, %v7350_v41 }
  0x16   :  { %6489 = vmatprep.subr.bf16.mxu0 %v6488_v51  ;;  %v6444_v49 = vpack.c.bf16 %v183_v35, %v176_v34  ;;  %v203_v53 = vsub.f32 %v7329_v31, %v202_v38  ;;  %v210_v55 = vsub.f32 %v7331_v32, %v209_v44  ;;  %v223_v57 = vand.u32 4294901760, %v7352_v42 }
  0x17   :  { %6427 = vmatpush3.bf16.msra.mxu1 %v7364_v47  ;;  %v197_v54 = vand.u32 4294901760, %v196_v43  ;;  %v230_v63 = vand.u32 4294901760, %v7367_v48  ;;  %v217_v9 = vsub.f32 %v7350_v41, %v216_v56  ;;  %v244_v26 = vand.u32 4294901760, %v7397_v1 }
  0x18   :  { %6429 = vmatprep.subr.bf16.mxu1 %v7388_v58  ;;  %v204_v62 = vand.u32 4294901760, %v203_v53  ;;  %v211_v8 = vand.u32 4294901760, %v210_v55  ;;  %v251_v46 = vand.u32 4294901760, %v7399_v2  ;;  %v258_v43 = vand.u32 4294901760, %v7418_v11 }
  0x19   :  { %6491 = vmatpush3.bf16.msra.mxu0 %v6488_v51  ;;  %v190_v51 = vand.u32 4294901760, %v189_v36  ;;  %v231_v21 = vsub.f32 %v7367_v48, %v230_v63  ;;  %v245_v35 = vsub.f32 %v7397_v1, %v244_v26  ;;  %v6544_v15 = vpack.c.bf16 %v195_v29, %v188_v24 }
  0x1a   :  { %6493 = vmatprep.subr.bf16.mxu0 %v6492_v0  ;;  %v6452_v27 = vpack.c.bf16 %v211_v8, %v204_v62  ;;  %v6548_v16 = vpack.c.bf16 %v209_v44, %v202_v38  ;;  %v6552_v17 = vpack.c.bf16 %v223_v57, %v216_v56  ;;  %v6560_v20 = vpack.c.bf16 %v251_v46, %v244_v26 }
  0x1b   :  { %6431 = vmatpush3.bf16.msra.mxu1 %v7388_v58  ;;  %v6448_v3 = vpack.c.bf16 %v197_v54, %v190_v51  ;;  %v246_v51 = vand.u32 4294901760, %v245_v35  ;;  %v259_v54 = vsub.f32 %v7418_v11, %v258_v43  ;;  %v6536_v11 = vpack.c.bf16 %v167_v61, %v160_v60 }
  0x1c   :  { %6433 = vmatprep.subr.bf16.mxu1 %v7404_v6  ;;  %v8394_v26 = vmov 0.0  }
  0x1d   :  { %6495 = vmatpush3.bf16.msra.mxu0 %v6492_v0  ;;  %v237_v0 = vand.u32 4294901760, %v7376_v52  ;;  %v260_v62 = vand.u32 4294901760, %v259_v54 }
  0x1e   :  { %6497 = vmatprep.subr.bf16.mxu0 %v6496_v10 }
  0x1f   :  { %6435 = vmatpush3.bf16.msra.mxu1 %v7404_v6  ;;  %v238_v23 = vsub.f32 %v7376_v52, %v237_v0  ;;  %v6556_v19 = vpack.c.bf16 %v237_v0, %v230_v63 }
  0x20   :  { %6437 = vmatprep.subr.bf16.mxu1 %v7431_v25 }
  0x21   :  { %6499 = vmatpush3.bf16.msra.mxu0 %v6496_v10  ;;  %v224_v10 = vsub.f32 %v7352_v42, %v223_v57  ;;  %v239_v34 = vand.u32 4294901760, %v238_v23  ;;  %v8396_v23 = vmov 0.0|0.0  }
  0x22   :  { %6501 = vmatprep.subr.bf16.mxu0 %v6500_v30 }
  0x23   :  { %6439 = vmatpush3.bf16.msra.mxu1 %v7431_v25  ;;  %v225_v33 = vand.u32 4294901760, %v224_v10 }
  0x24   :  { %6441 = vmatprep.subr.bf16.mxu1 %v6440_v40 }
  0x25   :  { %6503 = vmatpush3.bf16.msra.mxu0 %v6500_v30  ;;  %v218_v30 = vand.u32 4294901760, %v217_v9 }
  0x26   :  { %6505 = vmatprep.subr.bf16.mxu0 %v7296_v14  ;;  %5559 = vmatmul.mubr.f32.vlgmr.msra.gmra.mrb[0].mxu1 %v151_v45  ;;  %v265_v45 = vand.u32 4294901760, %v7420_v12 }
  0x27   :  { %6443 = vmatpush3.bf16.msra.mxu1 %v6440_v40  ;;  %5593 = vmatprep.mubr.f32.mxu1 %v7346_v39  ;;  %v6456_v36 = vpack.c.bf16 %v225_v33, %v218_v30  ;;  %v252_v40 = vsub.f32 %v7399_v2, %v251_v46 }
  0x28   :  { %5629 = vmatmul.mubr.f32.vlgmr.msra.gmra.mrb[0].mxu0 %v7407_v7  ;;  %6445 = vmatprep.subr.bf16.mxu1 %v6444_v49  ;;  %v266_v55 = vsub.f32 %v7420_v12, %v265_v45  ;;  %v6540_v12 = vpack.c.bf16 %v181_v5, %v174_v4  ;;  %v6564_v22 = vpack.c.bf16 %v265_v45, %v258_v43 }
  0x29   :  { %6507 = vmatpush3.bf16.msra.mxu0 %v7296_v14  ;;  %5663 = vmatprep.mubr.f32.mxu0 %v139_v50  ;;  %v232_v50 = vand.u32 4294901760, %v231_v21  ;;  %v253_v53 = vand.u32 4294901760, %v252_v40 }
  0x2a   :  { %6509 = vmatprep.subr.bf16.mxu0 %v7304_v18 }
  0x2b   :  { %6447 = vmatpush3.bf16.msra.mxu1 %v6444_v49  ;;  %v6460_v49 = vpack.c.bf16 %v239_v34, %v232_v50  ;;  %v6464_v2 = vpack.c.bf16 %v253_v53, %v246_v51  ;;  %v5073_v50 = vld [vmem:[%s8386_s4] ss:$0 sm:$0xff] }
  0x2c   :  { %6449 = vmatprep.subr.bf16.mxu1 %v6448_v3 }
  0x2d   :  { %6511 = vmatpush3.bf16.msra.mxu0 %v7304_v18 }
  0x2e   :  { %6513 = vmatprep.subr.bf16.mxu0 %v7324_v28 }
  0x2f   :  { %6451 = vmatpush3.bf16.msra.mxu1 %v6448_v3  ;;  %v267_v3 = vand.u32 4294901760, %v266_v55 }
  0x30   :  { %6453 = vmatprep.subr.bf16.mxu1 %v6452_v27 }
  0x31   :  { %6515 = vmatpush3.bf16.msra.mxu0 %v7324_v28  ;;  %v6468_v8 = vpack.c.bf16 %v267_v3, %v260_v62 }
  0x32   :  { %6517 = vmatprep.subr.bf16.mxu0 %v7343_v37 }
  0x33   :  { %6455 = vmatpush3.bf16.msra.mxu1 %v6452_v27  ;;  %v37_v27 = vld [vmem:[%s8385_s1] sm:$0xff] }
  0x34   :  { %6457 = vmatprep.subr.bf16.mxu1 %v6456_v36  ;;  %v1259_v30 = vsel %vm747_vm0, %v37_v27, 0  ;;  %v7722_v27 = vld [vmem:[%s8387_s5 + $0x60] sm:$0xff] }
  0x35   :  { %6519 = vmatpush3.bf16.msra.mxu0 %v7343_v37  ;;  %v7604_v33 = vand.u32 4294901760, %v1259_v30 }
  0x36   :  { %6521 = vmatprep.subr.bf16.mxu0 %v7364_v47 }
  0x37   :  { %6459 = vmatpush3.bf16.msra.mxu1 %v6456_v36  ;;  %v7607_v46 = vsub.f32 %v1259_v30, %v7604_v33  ;;  %v7727_v30 = vld [vmem:[%s8387_s5 + $0x68] sm:$0xff] }
  0x38   :  { %6461 = vmatprep.subr.bf16.mxu1 %v6460_v49 }
  0x39   :  { %6523 = vmatpush3.bf16.msra.mxu0 %v7364_v47  ;;  %v7613_v40 = vand.u32 4294901760, %v7607_v46 }
  0x3a   :  { %6525 = vmatprep.subr.bf16.mxu0 %v7388_v58 }
  0x3b   :  { %6463 = vmatpush3.bf16.msra.mxu1 %v6460_v49  ;;  %v1331_v53 = vsub.f32 %v7607_v46, %v7613_v40 }
  0x3c   :  { %6465 = vmatprep.subr.bf16.mxu1 %v6464_v2 }
  0x3d   :  { %6527 = vmatpush3.bf16.msra.mxu0 %v7388_v58 }
  0x3e   :  { %6529 = vmatprep.subr.bf16.mxu0 %v7404_v6 }
  0x3f   :  { %6467 = vmatpush3.bf16.msra.mxu1 %v6464_v2 }
  0x40   :  { %6469 = vmatprep.subr.bf16.mxu1 %v6468_v8 }
  0x41   :  { %6531 = vmatpush3.bf16.msra.mxu0 %v7404_v6 }
  0x42   :  { %6533 = vmatprep.subr.bf16.mxu0 %v7431_v25 }
  0x43   :  { %6471 = vmatpush3.bf16.msra.mxu1 %v6468_v8  ;;  %v7632_v8 = vand.u32 4294901760, %v1331_v53 }
  0x45   :  { %6535 = vmatpush3.bf16.msra.mxu0 %v7431_v25 }
  0x46   :  { %6537 = vmatprep.subr.bf16.mxu0 %v6536_v11  ;;  %5594 = vmatmul.mubr.f32.vlgmr.msra.gmra.mrb[0].mxu1 %v7390_v59 }
  0x48   :  { %5664 = vmatmul.mubr.f32.vlgmr.msra.gmra.mrb[0].mxu0 %v149_v13 }
  0x49   :  { %6539 = vmatpush3.bf16.msra.mxu0 %v6536_v11  ;;  %5698 = vmatprep.mubr.f32.mxu0 %v7346_v39 }
  0x4a   :  { %6541 = vmatprep.subr.bf16.mxu0 %v6540_v12 }
  0x4d   :  { %6543 = vmatpush3.bf16.msra.mxu0 %v6540_v12 }
  0x4e   :  { %6545 = vmatprep.subr.bf16.mxu0 %v6544_v15 }
  0x51   :  { %6547 = vmatpush3.bf16.msra.mxu0 %v6544_v15 }
  0x52   :  { %6549 = vmatprep.subr.bf16.mxu0 %v6548_v16 }
  0x55   :  { %6551 = vmatpush3.bf16.msra.mxu0 %v6548_v16 }
  0x56   :  { %6553 = vmatprep.subr.bf16.mxu0 %v6552_v17 }
  0x59   :  { %6555 = vmatpush3.bf16.msra.mxu0 %v6552_v17 }
  0x5a   :  { %6557 = vmatprep.subr.bf16.mxu0 %v6556_v19 }
  0x5d   :  { %6559 = vmatpush3.bf16.msra.mxu0 %v6556_v19 }
  0x5e   :  { %6561 = vmatprep.subr.bf16.mxu0 %v6560_v20 }
  0x61   :  { %6563 = vmatpush3.bf16.msra.mxu0 %v6560_v20 }
  0x62   :  { %6565 = vmatprep.subr.bf16.mxu0 %v6564_v22 }
  0x65   :  { %6567 = vmatpush3.bf16.msra.mxu0 %v6564_v22 }
  0x66   :  { %6569 = vmatprep.subr.bf16.mxu0 %v7296_v14 }
  0x68   :  { %5699 = vmatmul.mubr.f32.vlgmr.msra.gmra.mrb[0].mxu0 %v7390_v59 }
  0x69   :  { %6571 = vmatpush3.bf16.msra.mxu0 %v7296_v14  ;;  %5733 = vmatprep.mubr.f32.mxu0 %v7346_v39  ;;  %v35_v14 = vld [vmem:[%s8384_s0] sm:$0xff] }
  0x6a   :  { %6573 = vmatprep.subr.bf16.mxu0 %v7304_v18 }
  0x6d   :  { %6575 = vmatpush3.bf16.msra.mxu0 %v7304_v18  ;;  %v749_v18 = vsel %vm747_vm0, %v35_v14, 0  ;;  %v1721_v14 = vld [vmem:[%s8387_s5] sm:$0xff] }
  0x6e   :  { %6577 = vmatprep.subr.bf16.mxu0 %v7324_v28 }
  0x71   :  { %6579 = vmatpush3.bf16.msra.mxu0 %v7324_v28  ;;  %v7556_v28 = vand.u32 4294901760, %v749_v18 }
  0x72   :  { %6581 = vmatprep.subr.bf16.mxu0 %v7343_v37 }
  0x73   :  { %v7559_v31 = vsub.f32 %v749_v18, %v7556_v28  ;;  %v1722_v18 = vld [vmem:[%s8387_s5 + $0x8] sm:$0xff] }
  0x75   :  { %6583 = vmatpush3.bf16.msra.mxu0 %v7343_v37  ;;  %v7562_v32 = vand.u32 4294901760, %v7559_v31 }
  0x76   :  { %6585 = vmatprep.subr.bf16.mxu0 %v7364_v47 }
  0x77   :  { %v824_v37 = vsub.f32 %v7559_v31, %v7562_v32 }
  0x79   :  { %6587 = vmatpush3.bf16.msra.mxu0 %v7364_v47  ;;  %v7567_v39 = vand.u32 4294901760, %v824_v37  ;;  %v36_v47 = vld [vmem:[%s8384_s0 + $0x8] sm:$0xff]  ;;  %v1738_v37 = vand.u32 4294901760, %v1721_v14 }
  0x7a   :  { %6589 = vmatprep.subr.bf16.mxu0 %v7388_v58  ;;  %v752_v48 = vsel %vm747_vm0, %v36_v47, 0  ;;  %v1723_v47 = vld [vmem:[%s8387_s5 + $0x10] sm:$0xff] }
  0x7b   :  { %5740 = vmatprep.mubr.f32.mxu1 %v7567_v39  ;;  %v7574_v52 = vand.u32 4294901760, %v752_v48 }
  0x7d   :  { %6591 = vmatpush3.bf16.msra.mxu0 %v7388_v58  ;;  %v7577_v58 = vsub.f32 %v752_v48, %v7574_v52  ;;  %v1724_v48 = vld [vmem:[%s8387_s5 + $0x18] sm:$0xff] }
  0x7e   :  { %6593 = vmatprep.subr.bf16.mxu0 %v7404_v6 }
  0x7f   :  { %v7580_v60 = vand.u32 4294901760, %v7577_v58 }
  0x81   :  { %6595 = vmatpush3.bf16.msra.mxu0 %v7404_v6  ;;  %v834_v7 = vsub.f32 %v7577_v58, %v7580_v60 }
  0x82   :  { %6597 = vmatprep.subr.bf16.mxu0 %v7431_v25 }
  0x83   :  { %v7584_v44 = vand.u32 4294901760, %v834_v7 }
  0x85   :  { %6599 = vmatpush3.bf16.msra.mxu0 %v7431_v25 }
  0x88   :  { %5734 = vmatmul.mubr.f32.vlgmr.msra.gmra.mrb[0].mxu0 %v7390_v59 }
  0x89   :  { %6048 = vmatprep.mubr.f32.mxu0 %v7559_v31 }
 0x119   :  { %v5595_v41 = vpop.f32.mrb[0].mxu1 }
 0x11a   :  { %v304_v42 = vpop.f32.mrb[1].mxu1 }
 0x15b   :  { %v5735_v59 = vpop.f32.mrb[0].mxu0 }
 0x15c   :  { %v7110_v61 = vadd.f32 %v5735_v59, %v5595_v41  ;;  %v730_v1 = vpop.f32.mrb[1].mxu0  ;;  %v1741_v41 = vand.u32 4294901760, %v1722_v18  ;;  %v1744_v59 = vand.u32 4294901760, %v1723_v47 }
 0x15d   :  { %v7111_v4 = vadd.f32 %v730_v1, %v304_v42  ;;  %v1725_v1 = vld [vmem:[%s8387_s5 + $0x20] sm:$0xff] }
 0x15e   :  { %v758_v5 = vand.u32 4294901760, %v7110_v61  ;;  %v7671_v42 = vpack.c.bf16 %v1741_v41, %v1738_v37 }
 0x15f   :  { %v755_v6 = vand.u32 4294901760, %v7111_v4 }
 0x160   :  { %v850_v13 = vsub.f32 %v7110_v61, %v758_v5  ;;  %v1747_v61 = vand.u32 4294901760, %v1724_v48 }
 0x161   :  { %v6600_v24 = vpack.c.bf16 %v758_v5, %v755_v6  ;;  %v843_v25 = vsub.f32 %v7111_v4, %v755_v6  ;;  %v1726_v4 = vld [vmem:[%s8387_s5 + $0x28] sm:$0xff]  ;;  %v1750_v6 = vand.u32 4294901760, %v1725_v1 }
 0x162   :  { %v851_v29 = vand.u32 4294901760, %v850_v13  ;;  %v7689_v5 = vpack.c.bf16 %v1747_v61, %v1744_v59  ;;  %v1753_v7 = vand.u32 4294901760, %v1726_v4 }
 0x163   :  { %v844_v38 = vand.u32 4294901760, %v843_v25  ;;  %6601 = vmatprep.subr.bf16.mxu1 %v6600_v24  ;;  %v6608_v56 = vpack.c.bf16 %v850_v13, %v843_v25 }
 0x164   :  { %6603 = vmatpush3.bf16.msra.mxu1 %v6600_v24  ;;  %v852_v57 = vsub.f32 %v850_v13, %v851_v29  ;;  %v1727_v13 = vld [vmem:[%s8387_s5 + $0x30] sm:$0xff] }
 0x165   :  { %v845_v63 = vsub.f32 %v843_v25, %v844_v38  ;;  %v6616_v0 = vpack.c.bf16 %v851_v29, %v844_v38  ;;  %v7700_v25 = vpack.c.bf16 %v1753_v7, %v1750_v6  ;;  %v1756_v29 = vand.u32 4294901760, %v1727_v13 }
 0x166   :  { %v853_v9 = vand.u32 4294901760, %v852_v57  ;;  %v1730_v57 = vld [vmem:[%s8387_s5 + $0x48] sm:$0xff] }
 0x167   :  { %5741 = vmatmul.mubr.f32.vlgmr.msra.gmra.mrb[2].mxu1 %v7584_v44  ;;  %v846_v10 = vand.u32 4294901760, %v845_v63 }
 0x168   :  { %5747 = vmatprep.mubr.f32.mxu1 %v7556_v28 }
 0x169   :  { %v6604_v21 = vpack.c.bf16 %v853_v9, %v846_v10  ;;  %v1765_v9 = vand.u32 4294901760, %v1730_v57  ;;  %v1731_v10 = vld [vmem:[%s8387_s5 + $0x50] sm:$0xff] }
 0x16b   :  { %6605 = vmatprep.subr.bf16.mxu1 %v6604_v21 }
 0x16c   :  { %6607 = vmatpush3.bf16.msra.mxu1 %v6604_v21  ;;  %v1732_v21 = vld [vmem:[%s8387_s5 + $0x58] sm:$0xff] }
 0x16d   :  { %6609 = vmatprep.subr.bf16.mxu1 %v6608_v56 }
 0x16f   :  { %5748 = vmatmul.mubr.f32.vlgmr.msra.gmra.mrb[2].mxu1 %v7574_v52 }
 0x170   :  { %6611 = vmatpush3.bf16.msra.mxu1 %v6608_v56  ;;  %5754 = vmatprep.mubr.f32.mxu1 %v7559_v31  ;;  %v1729_v56 = vld [vmem:[%s8387_s5 + $0x40] sm:$0xff] }
 0x171   :  { %6613 = vmatprep.subr.bf16.mxu1 %v6600_v24 }
 0x177   :  { %5755 = vmatmul.mubr.f32.vlgmr.msra.gmra.mrb[2].mxu1 %v7577_v58 }
 0x178   :  { %6615 = vmatpush3.bf16.msra.mxu1 %v6600_v24  ;;  %5761 = vmatprep.mubr.f32.mxu1 %v7562_v32 }
 0x179   :  { %6617 = vmatprep.subr.bf16.mxu1 %v6616_v0 }
 0x17f   :  { %5762 = vmatmul.mubr.f32.vlgmr.msra.gmra.mrb[2].mxu1 %v7580_v60 }
 0x180   :  { %6619 = vmatpush3.bf16.msra.mxu1 %v6616_v0  ;;  %5768 = vmatprep.mubr.f32.mxu1 %v7556_v28  ;;  %v1762_v0 = vand.u32 4294901760, %v1729_v56 }
 0x181   :  { %6621 = vmatprep.subr.bf16.mxu1 %v6600_v24 }
 0x187   :  { %5769 = vmatmul.mubr.f32.vlgmr.msra.gmra.mrb[2].mxu1 %v7574_v52 }
 0x188   :  { %6623 = vmatpush3.bf16.msra.mxu1 %v6600_v24  ;;  %5775 = vmatprep.mubr.f32.mxu1 %v7556_v28  ;;  %v1728_v24 = vld [vmem:[%s8387_s5 + $0x38] sm:$0xff] }
 0x189   :  { %6624 = vmatprep.subr.bf16.mxu1 %v8396_v23  ;;  %v1759_v38 = vand.u32 4294901760, %v1728_v24 }
 0x18b   :  { %v7710_v63 = vpack.c.bf16 %v1759_v38, %v1756_v29 }
 0x18f   :  { %5776 = vmatmul.mubr.f32.vlgmr.msra.gmra.mrb[2].mxu1 %v7574_v52 }
 0x190   :  { %5782 = vmatprep.mubr.msk.f32.mxu1 %vm7210_vm1, %v8394_v26 }
 0x262   :  { %v5777_v34 = vpop.f32.mrb[2].mxu1 }
 0x263   :  { %v7112_v35 = vadd.f32 %v5777_v34, %v5073_v50  ;;  %v1246_v36 = vpop.f32.mrb[3].mxu1  ;;  %v7731_v34 = vsub.f32 %v1722_v18, %v1741_v41 }
 0x264   :  { %v7113_v43 = vadd.f32 %v5073_v50, %v1246_v36  ;;  %v7729_v50 = vsub.f32 %v1721_v14, %v1738_v37  ;;  %v1768_v36 = vand.u32 4294901760, %v1731_v10 }
 0x265   :  { %v1257_v45 = vmax.f32 %v7112_v35, 0.0  ;;  %v7734_v35 = vpack.c.bf16 %v1765_v9, %v1762_v0 }
 0x266   :  { %v1256_v49 = vmax.f32 %v7113_v43, 0.0  ;;  %v1771_v43 = vand.u32 4294901760, %v1732_v21  ;;  %v8399_v53 = vand.u32 4294901760, %v7729_v50 }
 0x267   :  { %v7615_v51 = vand.u32 4294901760, %v1257_v45 }
 0x268   :  { %v7619_v54 = vand.u32 4294901760, %v1256_v49  ;;  %v1842_v37 = vsub.f32 %v7729_v50, %v8399_v53 }
 0x269   :  { %v7622_v55 = vsub.f32 %v1257_v45, %v7615_v51  ;;  %v1774_v45 = vand.u32 4294901760, %v7722_v27 }
 0x26a   :  { %v7625_v2 = vsub.f32 %v1256_v49, %v7619_v54  ;;  %v6625_v62 = vpack.c.bf16 %v7615_v51, %v7619_v54  ;;  %v8400_v49 = vand.u32 4294901760, %v7727_v30  ;;  %v1843_v53 = vand.u32 4294901760, %v1842_v37 }
 0x26b   :  { %v7630_v3 = vand.u32 4294901760, %v7622_v55  ;;  %v7805_v37 = vsub.f32 %v1730_v57, %v1765_v9  ;;  %v7823_v9 = vsub.f32 %v1731_v10, %v1768_v36 }
 0x26c   :  { %v7635_v11 = vand.u32 4294901760, %v7625_v2  ;;  %6626 = vmatpush3.bf16.msra.mxu1 %v6625_v62  ;;  %v6631_v20 = vpack.c.bf16 %v7622_v55, %v7625_v2 }
 0x26d   :  { %6627 = vmatprep.subr.bf16.mxu1 %v8396_v23  ;;  %v1349_v12 = vsub.f32 %v7622_v55, %v7630_v3 }
 0x26e   :  { %v1342_v15 = vsub.f32 %v7625_v2, %v7635_v11  ;;  %v6637_v22 = vpack.c.bf16 %v7630_v3, %v7635_v11 }
 0x26f   :  { %5783 = vmatmul.mubr.f32.vlgmr.msra.gmra.mrb[4].mxu1 %v7632_v8  ;;  %v7643_v16 = vand.u32 4294901760, %v1349_v12  ;;  %v7742_v12 = vpack.c.bf16 %v1771_v43, %v1768_v36 }
 0x270   :  { %v1343_v17 = vand.u32 4294901760, %v1342_v15  ;;  %5789 = vmatprep.mubr.msk.f32.mxu1 %vm7210_vm1, %v8394_v26  ;;  %v7747_v15 = vld [vmem:[%s8387_s5 + $0x70] sm:$0xff] }
 0x271   :  { %v1780_v14 = vand.u32 4294901760, %v7747_v15 }
 0x272   :  { %v6628_v19 = vpack.c.bf16 %v7643_v16, %v1343_v17 }
 0x274   :  { %6629 = vmatpush3.bf16.msra.mxu1 %v6628_v19  ;;  %v7754_v19 = vsub.f32 %v1723_v47, %v1744_v59  ;;  %v7776_v59 = vsub.f32 %v1725_v1, %v1750_v6 }
 0x275   :  { %6630 = vmatprep.subr.bf16.mxu1 %v8396_v23 }
 0x276   :  { %v8401_v47 = vand.u32 4294901760, %v7754_v19  ;;  %v8406_v6 = vand.u32 4294901760, %v7776_v59 }
 0x277   :  { %5790 = vmatmul.mubr.f32.vlgmr.msra.gmra.mrb[4].mxu1 %v7604_v33 }
 0x278   :  { %6632 = vmatpush3.bf16.msra.mxu1 %v6631_v20  ;;  %5796 = vmatprep.mubr.msk.f32.mxu1 %vm7210_vm1, %v8394_v26  ;;  %v7756_v20 = vsub.f32 %v1724_v48, %v1747_v61  ;;  %v7778_v61 = vsub.f32 %v1726_v4, %v1753_v7  ;;  %v1856_v1 = vsub.f32 %v7754_v19, %v8401_v47 }
 0x279   :  { %6633 = vmatprep.subr.bf16.mxu1 %v8396_v23 }
 0x27a   :  { %v8402_v48 = vand.u32 4294901760, %v7756_v20  ;;  %v8404_v7 = vand.u32 4294901760, %v7778_v61 }
 0x27c   :  { %v1863_v4 = vsub.f32 %v7756_v20, %v8402_v48  ;;  %v1870_v48 = vsub.f32 %v7776_v59, %v8406_v6 }
 0x27e   :  { %v1864_v47 = vand.u32 4294901760, %v1863_v4  ;;  %v1871_v4 = vand.u32 4294901760, %v1870_v48 }
 0x27f   :  { %5797 = vmatmul.mubr.f32.vlgmr.msra.gmra.mrb[4].mxu1 %v7607_v46 }
 0x280   :  { %6635 = vmatpush3.bf16.msra.mxu1 %v6625_v62  ;;  %5803 = vmatprep.mubr.msk.f32.mxu1 %vm7210_vm1, %v8394_v26 }
 0x281   :  { %6636 = vmatprep.subr.bf16.mxu1 %v8396_v23 }
 0x287   :  { %5804 = vmatmul.mubr.f32.vlgmr.msra.gmra.mrb[4].mxu1 %v7613_v40 }
 0x288   :  { %6638 = vmatpush3.bf16.msra.mxu1 %v6637_v22  ;;  %5810 = vmatprep.mubr.msk.f32.mxu1 %vm7210_vm1, %v8394_v26  ;;  %v7762_v22 = vpack.c.bf16 %v8400_v49, %v1774_v45 }
 0x289   :  { %6639 = vmatprep.subr.bf16.mxu1 %v8396_v23  ;;  %v7782_v23 = vsub.f32 %v1728_v24, %v1759_v38  ;;  %v7803_v38 = vsub.f32 %v1729_v56, %v1762_v0  ;;  %v1904_v0 = vand.u32 4294901760, %v7805_v37 }
 0x28b   :  { %v8407_v24 = vand.u32 4294901760, %v7782_v23  ;;  %v1897_v57 = vand.u32 4294901760, %v7803_v38  ;;  %v1905_v10 = vsub.f32 %v7805_v37, %v1904_v0 }
 0x28d   :  { %v1891_v56 = vsub.f32 %v7782_v23, %v8407_v24  ;;  %v1898_v24 = vsub.f32 %v7803_v38, %v1897_v57 }
 0x28f   :  { %5811 = vmatmul.mubr.f32.vlgmr.msra.gmra.mrb[4].mxu1 %v7604_v33  ;;  %v1892_v6 = vand.u32 4294901760, %v1891_v56 }
 0x290   :  { %6641 = vmatpush3.bf16.msra.mxu1 %v6625_v62  ;;  %5817 = vmatprep.mubr.msk.f32.mxu1 %vm7210_vm1, %v8394_v26  ;;  %v8398_v62 = vand.u32 4294901760, %v7731_v34  ;;  %v7780_v26 = vsub.f32 %v1727_v13, %v1756_v29 }
 0x291   :  { %6643 = vmatprep.subr.bf16.mxu1 %v7671_v42 }
 0x292   :  { %v1849_v41 = vsub.f32 %v7731_v34, %v8398_v62  ;;  %v8405_v13 = vand.u32 4294901760, %v7780_v26 }
 0x294   :  { %v1850_v49 = vand.u32 4294901760, %v1849_v41  ;;  %v1857_v41 = vand.u32 4294901760, %v1856_v1 }
 0x296   :  { %v6674_v29 = vpack.c.bf16 %v1850_v49, %v1843_v53  ;;  %v1884_v49 = vsub.f32 %v7780_v26, %v8405_v13  ;;  %v7825_v53 = vsub.f32 %v1732_v21, %v1771_v43  ;;  %v6678_v1 = vpack.c.bf16 %v1864_v47, %v1857_v41 }
 0x297   :  { %5818 = vmatmul.mubr.f32.vlgmr.msra.gmra.mrb[4].mxu1 %v7604_v33  ;;  %v1911_v21 = vand.u32 4294901760, %v7823_v9  ;;  %v1906_v41 = vand.u32 4294901760, %v1905_v10 }
 0x298   :  { %6645 = vmatpush3.bf16.msra.mxu1 %v7671_v42  ;;  %5852 = vmatprep.mubr.f32.mxu1 %v1343_v17  ;;  %v7752_v17 = vld [vmem:[%s8387_s5 + $0x78] sm:$0xff]  ;;  %v1885_v13 = vand.u32 4294901760, %v1884_v49  ;;  %v1918_v36 = vand.u32 4294901760, %v7825_v53 }
 0x299   :  { %6647 = vmatprep.subr.bf16.mxu1 %v7689_v5  ;;  %v8403_v18 = vand.u32 4294901760, %v7752_v17  ;;  %v1912_v49 = vsub.f32 %v7823_v9, %v1911_v21 }
 0x29a   :  { %v6686_v48 = vpack.c.bf16 %v1892_v6, %v1885_v13  ;;  %v8421_v6 = vand.u32 4294901760, %v7752_v17 }
 0x29b   :  { %v7789_v62 = vpack.c.bf16 %v8403_v18, %v1780_v14  ;;  %v1877_v18 = vsub.f32 %v7778_v61, %v8404_v7  ;;  %v1913_v56 = vand.u32 4294901760, %v1912_v49 }
 0x29c   :  { %6649 = vmatpush3.bf16.msra.mxu1 %v7689_v5  ;;  %v7863_v13 = vsub.f32 %v7752_v17, %v8421_v6 }
 0x29d   :  { %6651 = vmatprep.subr.bf16.mxu1 %v7700_v25  ;;  %v1878_v7 = vand.u32 4294901760, %v1877_v18  ;;  %v8420_v18 = vand.u32 4294901760, %v7727_v30 }
 0x29f   :  { %v6682_v43 = vpack.c.bf16 %v1878_v7, %v1871_v4  ;;  %v7845_v47 = vsub.f32 %v7727_v30, %v8420_v18  ;;  %v1919_v7 = vsub.f32 %v7825_v53, %v1918_v36  ;;  %v7858_v30 = vsub.f32 %v7747_v15, %v1780_v14 }
 0x2a0   :  { %6653 = vmatpush3.bf16.msra.mxu1 %v7700_v25  ;;  %v1946_v14 = vand.u32 4294901760, %v7863_v13 }
 0x2a1   :  { %6655 = vmatprep.subr.bf16.mxu1 %v7710_v63  ;;  %v1939_v15 = vand.u32 4294901760, %v7858_v30 }
 0x2a4   :  { %6657 = vmatpush3.bf16.msra.mxu1 %v7710_v63 }
 0x2a5   :  { %6659 = vmatprep.subr.bf16.mxu1 %v7734_v35 }
 0x2a8   :  { %6661 = vmatpush3.bf16.msra.mxu1 %v7734_v35 }
 0x2a9   :  { %6663 = vmatprep.subr.bf16.mxu1 %v7742_v12 }
 0x2ac   :  { %6665 = vmatpush3.bf16.msra.mxu1 %v7742_v12 }
 0x2ad   :  { %6667 = vmatprep.subr.bf16.mxu1 %v7762_v22 }
 0x2b0   :  { %6669 = vmatpush3.bf16.msra.mxu1 %v7762_v22 }
 0x2b1   :  { %6671 = vmatprep.subr.bf16.mxu1 %v7789_v62 }
 0x2b4   :  { %6673 = vmatpush3.bf16.msra.mxu1 %v7789_v62 }
 0x2b5   :  { %6675 = vmatprep.subr.bf16.mxu1 %v6674_v29 }
 0x2b7   :  { %5853 = vmatmul.mubr.f32.vlgmr.msra.gmra.mrb[6].mxu1 %v7643_v16  ;;  %v7840_v16 = vsub.f32 %v7722_v27, %v1774_v45  ;;  %v1932_v45 = vand.u32 4294901760, %v7845_v47 }
 0x2b8   :  { %6677 = vmatpush3.bf16.msra.mxu1 %v6674_v29  ;;  %5887 = vmatprep.mubr.f32.mxu1 %v7619_v54  ;;  %v1899_v29 = vand.u32 4294901760, %v1898_v24 }
 0x2b9   :  { %6679 = vmatprep.subr.bf16.mxu1 %v6678_v1  ;;  %v1925_v27 = vand.u32 4294901760, %v7840_v16  ;;  %v1933_v10 = vsub.f32 %v7845_v47, %v1932_v45 }
 0x2ba   :  { %v6690_v24 = vpack.c.bf16 %v1906_v41, %v1899_v29  ;;  %v1940_v29 = vsub.f32 %v7858_v30, %v1939_v15  ;;  %v1947_v41 = vsub.f32 %v7863_v13, %v1946_v14 }
 0x2bb   :  { %v1926_v4 = vsub.f32 %v7840_v16, %v1925_v27  ;;  %v1934_v18 = vand.u32 4294901760, %v1933_v10  ;;  %v6722_v10 = vpack.c.bf16 %v7805_v37, %v7803_v38 }
 0x2bc   :  { %6681 = vmatpush3.bf16.msra.mxu1 %v6678_v1  ;;  %v1920_v1 = vand.u32 4294901760, %v1919_v7  ;;  %v1941_v7 = vand.u32 4294901760, %v1940_v29  ;;  %v1948_v6 = vand.u32 4294901760, %v1947_v41  ;;  %v8424_v29 = vand.u32 4294901760, %v7754_v19 }
 0x2bd   :  { %6683 = vmatprep.subr.bf16.mxu1 %v6682_v43  ;;  %v8425_v41 = vand.u32 4294901760, %v7756_v20 }
 0x2be   :  { %v6694_v17 = vpack.c.bf16 %v1920_v1, %v1913_v56  ;;  %v6706_v56 = vpack.c.bf16 %v7731_v34, %v7729_v50  ;;  %v6710_v1 = vpack.c.bf16 %v7756_v20, %v7754_v19  ;;  %v8429_v19 = vand.u32 4294901760, %v7782_v23 }
 0x2bf   :  { %v6790_v20 = vpack.c.bf16 %v1918_v36, %v1911_v21  ;;  %v8430_v21 = vmov 0.0|0.0   ;;  %v8431_v36 = vmov 0.0  }
 0x2c0   :  { %6685 = vmatpush3.bf16.msra.mxu1 %v6682_v43  ;;  %v1927_v43 = vand.u32 4294901760, %v1926_v4  ;;  %v6718_v4 = vpack.c.bf16 %v7782_v23, %v7780_v26  ;;  %v6794_v23 = vpack.c.bf16 %v1932_v45, %v1925_v27 }
 0x2c1   :  { %6687 = vmatprep.subr.bf16.mxu1 %v6686_v48 }
 0x2c2   :  { %v6698_v49 = vpack.c.bf16 %v1934_v18, %v1927_v43  ;;  %v6734_v43 = vpack.c.bf16 %v7863_v13, %v7858_v30 }
 0x2c4   :  { %6689 = vmatpush3.bf16.msra.mxu1 %v6686_v48  ;;  %v6702_v48 = vpack.c.bf16 %v1948_v6, %v1941_v7  ;;  %v8426_v7 = vand.u32 4294901760, %v7776_v59  ;;  %v8428_v6 = vand.u32 4294901760, %v7780_v26  ;;  %v6798_v26 = vpack.c.bf16 %v1946_v14, %v1939_v15 }
 0x2c5   :  { %6691 = vmatprep.subr.bf16.mxu1 %v6690_v24 }
 0x2c8   :  { %6693 = vmatpush3.bf16.msra.mxu1 %v6690_v24  ;;  %v6714_v24 = vpack.c.bf16 %v7778_v61, %v7776_v59 }
 0x2c9   :  { %6695 = vmatprep.subr.bf16.mxu1 %v6694_v17 }
 0x2cc   :  { %6697 = vmatpush3.bf16.msra.mxu1 %v6694_v17  ;;  %v6726_v17 = vpack.c.bf16 %v7825_v53, %v7823_v9 }
 0x2cd   :  { %6699 = vmatprep.subr.bf16.mxu1 %v6698_v49 }
 0x2d0   :  { %6701 = vmatpush3.bf16.msra.mxu1 %v6698_v49  ;;  %v6774_v49 = vpack.c.bf16 %v8425_v41, %v8424_v29 }
 0x2d1   :  { %6703 = vmatprep.subr.bf16.mxu1 %v6702_v48 }
 0x2d4   :  { %6705 = vmatpush3.bf16.msra.mxu1 %v6702_v48  ;;  %v6782_v48 = vpack.c.bf16 %v8429_v19, %v8428_v6  ;;  %v3393_v6 = vld [vmem:[%s8390_s7 + $0x8] sm:$0xff] }
 0x2d5   :  { %6707 = vmatprep.subr.bf16.mxu1 %v6706_v56 }
 0x2d7   :  { %5888 = vmatmul.mubr.f32.vlgmr.msra.gmra.mrb[6].mxu1 %v7615_v51 }
 0x2d8   :  { %6709 = vmatpush3.bf16.msra.mxu1 %v6706_v56  ;;  %5922 = vmatprep.mubr.f32.mxu1 %v7625_v2  ;;  %v6730_v2 = vpack.c.bf16 %v7845_v47, %v7840_v16  ;;  %v5074_v47 = vld [vmem:[%s8389_s6] ss:$0 sm:$0xff] }
 0x2d9   :  { %6711 = vmatprep.subr.bf16.mxu1 %v6710_v1 }
 0x2dc   :  { %6713 = vmatpush3.bf16.msra.mxu1 %v6710_v1 }
 0x2dd   :  { %6715 = vmatprep.subr.bf16.mxu1 %v6714_v24 }
 0x2e0   :  { %6717 = vmatpush3.bf16.msra.mxu1 %v6714_v24 }
 0x2e1   :  { %6719 = vmatprep.subr.bf16.mxu1 %v6718_v4 }
 0x2e4   :  { %6721 = vmatpush3.bf16.msra.mxu1 %v6718_v4 }
 0x2e5   :  { %6723 = vmatprep.subr.bf16.mxu1 %v6722_v10 }
 0x2e8   :  { %6725 = vmatpush3.bf16.msra.mxu1 %v6722_v10 }
 0x2e9   :  { %6727 = vmatprep.subr.bf16.mxu1 %v6726_v17 }
 0x2ec   :  { %6729 = vmatpush3.bf16.msra.mxu1 %v6726_v17 }
 0x2ed   :  { %6731 = vmatprep.subr.bf16.mxu1 %v6730_v2 }
 0x2f0   :  { %6733 = vmatpush3.bf16.msra.mxu1 %v6730_v2 }
 0x2f1   :  { %6735 = vmatprep.subr.bf16.mxu1 %v6734_v43 }
 0x2f4   :  { %6737 = vmatpush3.bf16.msra.mxu1 %v6734_v43 }
 0x2f5   :  { %6739 = vmatprep.subr.bf16.mxu1 %v7671_v42 }
 0x2f7   :  { %5923 = vmatmul.mubr.f32.vlgmr.msra.gmra.mrb[6].mxu1 %v7622_v55  ;;  %v8422_v55 = vand.u32 4294901760, %v7729_v50  ;;  %v8427_v50 = vand.u32 4294901760, %v7778_v61 }
 0x2f8   :  { %6741 = vmatpush3.bf16.msra.mxu1 %v7671_v42  ;;  %5957 = vmatprep.mubr.f32.mxu1 %v7635_v11  ;;  %v8423_v11 = vand.u32 4294901760, %v7731_v34 }
 0x2f9   :  { %6743 = vmatprep.subr.bf16.mxu1 %v7689_v5  ;;  %v6778_v34 = vpack.c.bf16 %v8427_v50, %v8426_v7 }
 0x2fa   :  { %v6770_v18 = vpack.c.bf16 %v8423_v11, %v8422_v55 }
 0x2fc   :  { %6745 = vmatpush3.bf16.msra.mxu1 %v7689_v5 }
 0x2fd   :  { %6747 = vmatprep.subr.bf16.mxu1 %v7700_v25 }
 0x300   :  { %6749 = vmatpush3.bf16.msra.mxu1 %v7700_v25 }
 0x301   :  { %6751 = vmatprep.subr.bf16.mxu1 %v7710_v63 }
 0x304   :  { %6753 = vmatpush3.bf16.msra.mxu1 %v7710_v63 }
 0x305   :  { %6755 = vmatprep.subr.bf16.mxu1 %v7734_v35 }
 0x308   :  { %6757 = vmatpush3.bf16.msra.mxu1 %v7734_v35 }
 0x309   :  { %6759 = vmatprep.subr.bf16.mxu1 %v7742_v12 }
 0x30c   :  { %6761 = vmatpush3.bf16.msra.mxu1 %v7742_v12 }
 0x30d   :  { %6763 = vmatprep.subr.bf16.mxu1 %v7762_v22 }
 0x310   :  { %6765 = vmatpush3.bf16.msra.mxu1 %v7762_v22 }
 0x311   :  { %6767 = vmatprep.subr.bf16.mxu1 %v7789_v62 }
 0x314   :  { %6769 = vmatpush3.bf16.msra.mxu1 %v7789_v62 }
 0x315   :  { %6771 = vmatprep.subr.bf16.mxu1 %v6770_v18 }
 0x317   :  { %5958 = vmatmul.mubr.f32.vlgmr.msra.gmra.mrb[6].mxu1 %v7630_v3  ;;  %v6786_v3 = vpack.c.bf16 %v1904_v0, %v1897_v57 }
 0x318   :  { %6773 = vmatpush3.bf16.msra.mxu1 %v6770_v18  ;;  %5992 = vmatprep.mubr.f32.mxu1 %v7619_v54 }
 0x319   :  { %6775 = vmatprep.subr.bf16.mxu1 %v6774_v49 }
 0x31c   :  { %6777 = vmatpush3.bf16.msra.mxu1 %v6774_v49 }
 0x31d   :  { %6779 = vmatprep.subr.bf16.mxu1 %v6778_v34 }
 0x320   :  { %6781 = vmatpush3.bf16.msra.mxu1 %v6778_v34  ;;  %v3392_v34 = vld [vmem:[%s8390_s7] sm:$0xff] }
 0x321   :  { %6783 = vmatprep.subr.bf16.mxu1 %v6782_v48  ;;  %v3409_v19 = vand.u32 4294901760, %v3392_v34 }
 0x324   :  { %6785 = vmatpush3.bf16.msra.mxu1 %v6782_v48  ;;  %v3412_v48 = vand.u32 4294901760, %v3393_v6 }
 0x325   :  { %6787 = vmatprep.subr.bf16.mxu1 %v6786_v3 }
 0x328   :  { %6789 = vmatpush3.bf16.msra.mxu1 %v6786_v3  ;;  %v8041_v3 = vpack.c.bf16 %v3412_v48, %v3409_v19 }
 0x329   :  { %6791 = vmatprep.subr.bf16.mxu1 %v6790_v20 }
 0x32c   :  { %6793 = vmatpush3.bf16.msra.mxu1 %v6790_v20  ;;  %v3394_v20 = vld [vmem:[%s8390_s7 + $0x10] sm:$0xff] }
 0x32d   :  { %6795 = vmatprep.subr.bf16.mxu1 %v6794_v23 }
 0x330   :  { %6797 = vmatpush3.bf16.msra.mxu1 %v6794_v23  ;;  %v3395_v23 = vld [vmem:[%s8390_s7 + $0x18] sm:$0xff] }
 0x331   :  { %6799 = vmatprep.subr.bf16.mxu1 %v6798_v26 }
 0x334   :  { %6801 = vmatpush3.bf16.msra.mxu1 %v6798_v26  ;;  %v3415_v26 = vand.u32 4294901760, %v3394_v20 }
 0x335   :  { %6803 = vmatprep.subr.bf16.mxu1 %v7671_v42 }
 0x337   :  { %5993 = vmatmul.mubr.f32.vlgmr.msra.gmra.mrb[6].mxu1 %v7615_v51 }
 0x338   :  { %6805 = vmatpush3.bf16.msra.mxu1 %v7671_v42  ;;  %6027 = vmatprep.mubr.f32.mxu1 %v7619_v54 }
 0x339   :  { %6807 = vmatprep.subr.bf16.mxu1 %v7689_v5 }
 0x33c   :  { %6809 = vmatpush3.bf16.msra.mxu1 %v7689_v5 }
 0x33d   :  { %6811 = vmatprep.subr.bf16.mxu1 %v7700_v25 }
 0x340   :  { %6813 = vmatpush3.bf16.msra.mxu1 %v7700_v25 }
 0x341   :  { %6815 = vmatprep.subr.bf16.mxu1 %v7710_v63 }
 0x344   :  { %6817 = vmatpush3.bf16.msra.mxu1 %v7710_v63 }
 0x345   :  { %6819 = vmatprep.subr.bf16.mxu1 %v7734_v35 }
 0x348   :  { %6821 = vmatpush3.bf16.msra.mxu1 %v7734_v35 }
 0x349   :  { %6823 = vmatprep.subr.bf16.mxu1 %v7742_v12 }
 0x34c   :  { %6825 = vmatpush3.bf16.msra.mxu1 %v7742_v12 }
 0x34d   :  { %6827 = vmatprep.subr.bf16.mxu1 %v7762_v22 }
 0x350   :  { %6829 = vmatpush3.bf16.msra.mxu1 %v7762_v22 }
 0x351   :  { %6831 = vmatprep.subr.bf16.mxu1 %v7789_v62 }
 0x354   :  { %6833 = vmatpush3.bf16.msra.mxu1 %v7789_v62 }
 0x357   :  { %6028 = vmatmul.mubr.f32.vlgmr.msra.gmra.mrb[6].mxu1 %v7615_v51 }
 0x358   :  { %6034 = vmatprep.mubr.f32.mxu1 %v7567_v39 }
 0x36a   :  { %v1716_v54 = vpop.f32.mrb[4].mxu1 }
 0x36b   :  { %1720 = vst [vmem:[%s8388_s9] sm:$0xff] %v1716_v54  ;;  %v5819_v42 = vpop.f32.mrb[5].mxu1  ;;  %v3418_v54 = vand.u32 4294901760, %v3395_v23 }
 0x36c   :  { %v3396_v42 = vld [vmem:[%s8390_s7 + $0x20] sm:$0xff] }
 0x42a   :  { %v6029_v5 = vpop.f32.mrb[6].mxu1 }
 0x42b   :  { %v2432_v25 = vand.u32 4294901760, %v6029_v5  ;;  %v2411_v63 = vpop.f32.mrb[7].mxu1 }
 0x42c   :  { %v2429_v35 = vand.u32 4294901760, %v2411_v63 }
 0x42d   :  { %v2524_v12 = vsub.f32 %v6029_v5, %v2432_v25  ;;  %v3397_v5 = vld [vmem:[%s8390_s7 + $0x28] sm:$0xff] }
 0x42e   :  { %v6834_v22 = vpack.c.bf16 %v2432_v25, %v2429_v35  ;;  %v2517_v59 = vsub.f32 %v2411_v63, %v2429_v35  ;;  %v8059_v25 = vpack.c.bf16 %v3418_v54, %v3415_v26  ;;  %v3421_v63 = vand.u32 4294901760, %v3396_v42 }
 0x42f   :  { %v2525_v61 = vand.u32 4294901760, %v2524_v12  ;;  %v3424_v35 = vand.u32 4294901760, %v3397_v5 }
 0x430   :  { %v2518_v38 = vand.u32 4294901760, %v2517_v59  ;;  %6835 = vmatprep.subr.bf16.mxu1 %v6834_v22  ;;  %v6842_v62 = vpack.c.bf16 %v2524_v12, %v2517_v59 }
 0x431   :  { %v2526_v51 = vsub.f32 %v2524_v12, %v2525_v61  ;;  %6837 = vmatpush3.bf16.msra.mxu1 %v6834_v22  ;;  %v3398_v12 = vld [vmem:[%s8390_s7 + $0x30] sm:$0xff] }
 0x432   :  { %v2519_v37 = vsub.f32 %v2517_v59, %v2518_v38  ;;  %6843 = vmatprep.subr.bf16.mxu0 %v6842_v62  ;;  %v6850_v57 = vpack.c.bf16 %v2525_v61, %v2518_v38  ;;  %v8070_v59 = vpack.c.bf16 %v3424_v35, %v3421_v63  ;;  %v3427_v61 = vand.u32 4294901760, %v3398_v12 }
 0x433   :  { %6845 = vmatpush3.bf16.msra.mxu0 %v6842_v62  ;;  %v2527_v0 = vand.u32 4294901760, %v2526_v51  ;;  %v3400_v62 = vld [vmem:[%s8390_s7 + $0x40] sm:$0xff]  ;;  %v3401_v51 = vld [vmem:[%s8390_s7 + $0x48] sm:$0xff] }
 0x434   :  { %6847 = vmatprep.subr.bf16.mxu0 %v6834_v22  ;;  %v2520_v9 = vand.u32 4294901760, %v2519_v37  ;;  %6035 = vmatmul.mubr.f32.vlgmr.msra.gmra.mrb[8].mxu1 %v7584_v44 }
 0x435   :  { %6041 = vmatprep.mubr.f32.mxu1 %v7556_v28 }
 0x436   :  { %6049 = vmatmul.mubr.f32.vlgmr.msra.gmra.mrb[2].mxu0 %v7577_v58  ;;  %v6838_v53 = vpack.c.bf16 %v2527_v0, %v2520_v9  ;;  %v3436_v0 = vand.u32 4294901760, %v3401_v51  ;;  %v3402_v9 = vld [vmem:[%s8390_s7 + $0x50] sm:$0xff] }
 0x437   :  { %6849 = vmatpush3.bf16.msra.mxu0 %v6834_v22  ;;  %6055 = vmatprep.mubr.f32.mxu0 %v7562_v32 }
 0x438   :  { %6839 = vmatprep.subr.bf16.mxu1 %v6838_v53  ;;  %6851 = vmatprep.subr.bf16.mxu0 %v6850_v57 }
 0x439   :  { %6841 = vmatpush3.bf16.msra.mxu1 %v6838_v53  ;;  %v3403_v53 = vld [vmem:[%s8390_s7 + $0x58] sm:$0xff] }
 0x43c   :  { %6042 = vmatmul.mubr.f32.vlgmr.msra.gmra.mrb[8].mxu1 %v7574_v52 }
 0x43d   :  { %6328 = vmatprep.mubr.f32.mxu1 %v7567_v39 }
 0x43e   :  { %6056 = vmatmul.mubr.f32.vlgmr.msra.gmra.mrb[2].mxu0 %v7580_v60 }
 0x43f   :  { %6853 = vmatpush3.bf16.msra.mxu0 %v6850_v57  ;;  %6062 = vmatprep.mubr.f32.mxu0 %v7556_v28  ;;  %v3433_v57 = vand.u32 4294901760, %v3400_v62 }
 0x440   :  { %6855 = vmatprep.subr.bf16.mxu0 %v6834_v22 }
 0x446   :  { %6063 = vmatmul.mubr.f32.vlgmr.msra.gmra.mrb[2].mxu0 %v7574_v52 }
 0x447   :  { %6857 = vmatpush3.bf16.msra.mxu0 %v6834_v22  ;;  %6069 = vmatprep.mubr.f32.mxu0 %v7556_v28  ;;  %v3399_v22 = vld [vmem:[%s8390_s7 + $0x38] sm:$0xff] }
 0x448   :  { %6858 = vmatprep.subr.bf16.mxu0 %v8430_v21  ;;  %v3430_v38 = vand.u32 4294901760, %v3399_v22 }
 0x44a   :  { %v8080_v37 = vpack.c.bf16 %v3430_v38, %v3427_v61 }
 0x44e   :  { %6070 = vmatmul.mubr.f32.vlgmr.msra.gmra.mrb[2].mxu0 %v7574_v52 }
 0x44f   :  { %6076 = vmatprep.mubr.msk.f32.mxu0 %vm7210_vm1, %v8431_v36 }
 0x50f   :  { %v6043_v16 = vpop.f32.mrb[8].mxu1 }
 0x510   :  { %v2592_v39 = vpop.f32.mrb[9].mxu1  ;;  %v7114_v27 = vadd.f32 %v6043_v16, %v5074_v47  ;;  %v8092_v16 = vld [vmem:[%s8390_s7 + $0x60] sm:$0xff] }
 0x511   :  { %v7116_v45 = vadd.f32 %v5074_v47, %v2592_v39  ;;  %v8097_v39 = vld [vmem:[%s8390_s7 + $0x68] sm:$0xff]  ;;  %v8099_v47 = vsub.f32 %v3392_v34, %v3409_v19 }
 0x521   :  { %v6071_v30 = vpop.f32.mrb[2].mxu0 }
 0x522   :  { %v7115_v13 = vadd.f32 %v7114_v27, %v6071_v30  ;;  %v2920_v15 = vpop.f32.mrb[3].mxu0  ;;  %v8101_v27 = vsub.f32 %v3393_v6, %v3412_v48  ;;  %v3439_v30 = vand.u32 4294901760, %v3402_v9 }
 0x523   :  { %v7117_v14 = vadd.f32 %v7116_v45, %v2920_v15  ;;  %v8104_v45 = vpack.c.bf16 %v3436_v0, %v3433_v57  ;;  %v8411_v15 = vand.u32 4294901760, %v8092_v16 }
 0x524   :  { %v2931_v56 = vmax.f32 %v7115_v13, 0.0  ;;  %v3442_v13 = vand.u32 4294901760, %v3403_v53 }
 0x525   :  { %v2930_v1 = vmax.f32 %v7117_v14, 0.0  ;;  %v8408_v14 = vand.u32 4294901760, %v8097_v39 }
 0x526   :  { %v7989_v24 = vand.u32 4294901760, %v2931_v56 }
 0x527   :  { %v7991_v4 = vand.u32 4294901760, %v2930_v1 }
 0x528   :  { %v7994_v10 = vsub.f32 %v2931_v56, %v7989_v24  ;;  %v8410_v56 = vand.u32 4294901760, %v8099_v47 }
 0x529   :  { %v7997_v17 = vsub.f32 %v2930_v1, %v7991_v4  ;;  %v6859_v2 = vpack.c.bf16 %v7989_v24, %v7991_v4  ;;  %v8409_v1 = vand.u32 4294901760, %v8101_v27 }
 0x52a   :  { %v8002_v43 = vand.u32 4294901760, %v7994_v10  ;;  %v3513_v6 = vsub.f32 %v8099_v47, %v8410_v56 }
 0x52b   :  { %v8005_v55 = vand.u32 4294901760, %v7997_v17  ;;  %6860 = vmatpush3.bf16.msra.mxu0 %v6859_v2  ;;  %v6865_v7 = vpack.c.bf16 %v7994_v10, %v7997_v17  ;;  %v3520_v19 = vsub.f32 %v8101_v27, %v8409_v1 }
 0x52c   :  { %6861 = vmatprep.subr.bf16.mxu0 %v8430_v21  ;;  %v3020_v11 = vsub.f32 %v7994_v10, %v8002_v43  ;;  %v3514_v56 = vand.u32 4294901760, %v3513_v6  ;;  %v8175_v6 = vsub.f32 %v3401_v51, %v3436_v0  ;;  %v8193_v0 = vsub.f32 %v3402_v9, %v3439_v30 }
 0x52d   :  { %v3013_v18 = vsub.f32 %v7997_v17, %v8005_v55  ;;  %v6871_v50 = vpack.c.bf16 %v8002_v43, %v8005_v55 }
 0x52e   :  { %6077 = vmatmul.mubr.f32.vlgmr.msra.gmra.mrb[4].mxu0 %v7632_v8  ;;  %v8013_v29 = vand.u32 4294901760, %v3020_v11  ;;  %v8117_v11 = vld [vmem:[%s8390_s7 + $0x70] sm:$0xff] }
 0x52f   :  { %v3014_v41 = vand.u32 4294901760, %v3013_v18  ;;  %6083 = vmatprep.mubr.msk.f32.mxu0 %vm7210_vm1, %v8431_v36  ;;  %v8122_v18 = vld [vmem:[%s8390_s7 + $0x78] sm:$0xff] }
 0x530   :  { %v8414_v34 = vand.u32 4294901760, %v8122_v18 }
 0x531   :  { %v6862_v49 = vpack.c.bf16 %v8013_v29, %v3014_v41 }
 0x533   :  { %6863 = vmatpush3.bf16.msra.mxu0 %v6862_v49  ;;  %v8126_v49 = vsub.f32 %v3395_v23, %v3418_v54  ;;  %v8146_v23 = vsub.f32 %v3396_v42, %v3421_v63  ;;  %v8150_v54 = vsub.f32 %v3398_v12, %v3427_v61 }
 0x534   :  { %6864 = vmatprep.subr.bf16.mxu0 %v8430_v21 }
 0x535   :  { %v8417_v63 = vand.u32 4294901760, %v8146_v23  ;;  %v8416_v12 = vand.u32 4294901760, %v8150_v54 }
 0x536   :  { %6084 = vmatmul.mubr.f32.vlgmr.msra.gmra.mrb[4].mxu0 %v7604_v33 }
 0x537   :  { %6866 = vmatpush3.bf16.msra.mxu0 %v6865_v7  ;;  %6090 = vmatprep.mubr.msk.f32.mxu0 %vm7210_vm1, %v8431_v36  ;;  %v8132_v7 = vpack.c.bf16 %v8408_v14, %v8411_v15  ;;  %v8152_v14 = vsub.f32 %v3399_v22, %v3430_v38  ;;  %v3521_v15 = vand.u32 4294901760, %v3520_v19  ;;  %v8173_v38 = vsub.f32 %v3400_v62, %v3433_v57 }
 0x538   :  { %6867 = vmatprep.subr.bf16.mxu0 %v8430_v21  ;;  %v3575_v57 = vand.u32 4294901760, %v8175_v6 }
 0x539   :  { %v8418_v22 = vand.u32 4294901760, %v8152_v14  ;;  %v6908_v61 = vpack.c.bf16 %v3521_v15, %v3514_v56  ;;  %v3555_v15 = vsub.f32 %v8150_v54, %v8416_v12  ;;  %v3568_v51 = vand.u32 4294901760, %v8173_v38 }
 0x53a   :  { %v8195_v56 = vsub.f32 %v3403_v53, %v3442_v13  ;;  %v3576_v9 = vsub.f32 %v8175_v6, %v3575_v57  ;;  %v3582_v53 = vand.u32 4294901760, %v8193_v0 }
 0x53b   :  { %v3562_v62 = vsub.f32 %v8152_v14, %v8418_v22  ;;  %v3556_v12 = vand.u32 4294901760, %v3555_v15  ;;  %v3569_v22 = vsub.f32 %v8173_v38, %v3568_v51 }
 0x53c   :  { %v3577_v15 = vand.u32 4294901760, %v3576_v9 }
 0x53e   :  { %6091 = vmatmul.mubr.f32.vlgmr.msra.gmra.mrb[4].mxu0 %v7607_v46 }
 0x53f   :  { %6869 = vmatpush3.bf16.msra.mxu0 %v6859_v2  ;;  %6097 = vmatprep.mubr.msk.f32.mxu0 %vm7210_vm1, %v8431_v36 }
 0x540   :  { %6870 = vmatprep.subr.bf16.mxu0 %v8430_v21 }
 0x546   :  { %6098 = vmatmul.mubr.f32.vlgmr.msra.gmra.mrb[4].mxu0 %v7613_v40 }
 0x547   :  { %6872 = vmatpush3.bf16.msra.mxu0 %v6871_v50  ;;  %6104 = vmatprep.mubr.msk.f32.mxu0 %vm7210_vm1, %v8431_v36  ;;  %v3451_v50 = vand.u32 4294901760, %v8117_v11 }
 0x548   :  { %6873 = vmatprep.subr.bf16.mxu0 %v8430_v21 }
 0x549   :  { %v8159_v1 = vpack.c.bf16 %v8414_v34, %v3451_v50 }
 0x54e   :  { %6105 = vmatmul.mubr.f32.vlgmr.msra.gmra.mrb[4].mxu0 %v7604_v33 }
 0x54f   :  { %6875 = vmatpush3.bf16.msra.mxu0 %v6859_v2  ;;  %6111 = vmatprep.mubr.msk.f32.mxu0 %vm7210_vm1, %v8431_v36  ;;  %v8112_v2 = vpack.c.bf16 %v3442_v13, %v3439_v30  ;;  %v3589_v30 = vand.u32 4294901760, %v8195_v56 }
 0x550   :  { %6877 = vmatprep.subr.bf16.mxu0 %v8041_v3 }
 0x556   :  { %6112 = vmatmul.mubr.f32.vlgmr.msra.gmra.mrb[4].mxu0 %v7604_v33 }
 0x557   :  { %6879 = vmatpush3.bf16.msra.mxu0 %v8041_v3  ;;  %6146 = vmatprep.mubr.f32.mxu0 %v3014_v41  ;;  %v8124_v41 = vsub.f32 %v3394_v20, %v3415_v26  ;;  %v8413_v20 = vand.u32 4294901760, %v8126_v49  ;;  %v8148_v26 = vsub.f32 %v3397_v5, %v3424_v35 }
 0x558   :  { %6881 = vmatprep.subr.bf16.mxu0 %v8059_v25 }
 0x559   :  { %v8412_v48 = vand.u32 4294901760, %v8124_v41  ;;  %v3534_v5 = vsub.f32 %v8126_v49, %v8413_v20  ;;  %v8415_v35 = vand.u32 4294901760, %v8148_v26  ;;  %v3541_v20 = vsub.f32 %v8146_v23, %v8417_v63 }
 0x55a   :  { %v3563_v63 = vand.u32 4294901760, %v3562_v62  ;;  %v3583_v62 = vsub.f32 %v8193_v0, %v3582_v53 }
 0x55b   :  { %6883 = vmatpush3.bf16.msra.mxu0 %v8059_v25  ;;  %v3527_v42 = vsub.f32 %v8124_v41, %v8412_v48  ;;  %v3535_v48 = vand.u32 4294901760, %v3534_v5  ;;  %v3548_v34 = vsub.f32 %v8148_v26, %v8415_v35  ;;  %v3542_v5 = vand.u32 4294901760, %v3541_v20 }
 0x55c   :  { %6885 = vmatprep.subr.bf16.mxu0 %v8070_v59 }
 0x55d   :  { %v3528_v19 = vand.u32 4294901760, %v3527_v42  ;;  %v3549_v35 = vand.u32 4294901760, %v3548_v34 }
 0x55f   :  { %6887 = vmatpush3.bf16.msra.mxu0 %v8070_v59  ;;  %v6912_v42 = vpack.c.bf16 %v3535_v48, %v3528_v19  ;;  %v6916_v13 = vpack.c.bf16 %v3549_v35, %v3542_v5  ;;  %v8433_v48 = vand.u32 4294901760, %v8097_v39  ;;  %v3570_v19 = vand.u32 4294901760, %v3569_v22 }
 0x560   :  { %6889 = vmatprep.subr.bf16.mxu0 %v8080_v37  ;;  %v3590_v35 = vsub.f32 %v8195_v56, %v3589_v30 }
 0x561   :  { %v8215_v20 = vsub.f32 %v8097_v39, %v8433_v48  ;;  %v8228_v39 = vsub.f32 %v8117_v11, %v3451_v50  ;;  %v6924_v22 = vpack.c.bf16 %v3577_v15, %v3570_v19 }
 0x562   :  { %v3591_v9 = vand.u32 4294901760, %v3590_v35 }
 0x563   :  { %6891 = vmatpush3.bf16.msra.mxu0 %v8080_v37  ;;  %v8419_v5 = vand.u32 4294901760, %v8215_v20  ;;  %v3610_v11 = vand.u32 4294901760, %v8228_v39 }
 0x564   :  { %6893 = vmatprep.subr.bf16.mxu0 %v8104_v45 }
 0x565   :  { %v3604_v48 = vsub.f32 %v8215_v20, %v8419_v5  ;;  %v3611_v15 = vsub.f32 %v8228_v39, %v3610_v11 }
 0x567   :  { %6895 = vmatpush3.bf16.msra.mxu0 %v8104_v45  ;;  %v3605_v19 = vand.u32 4294901760, %v3604_v48  ;;  %v6960_v48 = vpack.c.bf16 %v8195_v56, %v8193_v0 }
 0x568   :  { %6897 = vmatprep.subr.bf16.mxu0 %v8112_v2 }
 0x56b   :  { %6899 = vmatpush3.bf16.msra.mxu0 %v8112_v2 }
 0x56c   :  { %6901 = vmatprep.subr.bf16.mxu0 %v8132_v7 }
 0x56f   :  { %6903 = vmatpush3.bf16.msra.mxu0 %v8132_v7 }
 0x570   :  { %6905 = vmatprep.subr.bf16.mxu0 %v8159_v1 }
 0x573   :  { %6907 = vmatpush3.bf16.msra.mxu0 %v8159_v1 }
 0x574   :  { %6909 = vmatprep.subr.bf16.mxu0 %v6908_v61 }
 0x576   :  { %6147 = vmatmul.mubr.f32.vlgmr.msra.gmra.mrb[6].mxu0 %v8013_v29  ;;  %v8432_v29 = vand.u32 4294901760, %v8092_v16 }
 0x577   :  { %6911 = vmatpush3.bf16.msra.mxu0 %v6908_v61  ;;  %6181 = vmatprep.mubr.f32.mxu0 %v7991_v4  ;;  %v6920_v61 = vpack.c.bf16 %v3563_v63, %v3556_v12  ;;  %v8434_v63 = vand.u32 4294901760, %v8122_v18 }
 0x578   :  { %6913 = vmatprep.subr.bf16.mxu0 %v6912_v42  ;;  %v8210_v34 = vsub.f32 %v8092_v16, %v8432_v29 }
 0x579   :  { %v8233_v12 = vsub.f32 %v8122_v18, %v8434_v63  ;;  %v3612_v63 = vand.u32 4294901760, %v3611_v15  ;;  %v8438_v15 = vand.u32 4294901760, %v8126_v49 }
 0x57a   :  { %v3596_v16 = vand.u32 4294901760, %v8210_v34 }
 0x57b   :  { %6915 = vmatpush3.bf16.msra.mxu0 %v6912_v42  ;;  %v3584_v42 = vand.u32 4294901760, %v3583_v62  ;;  %v3617_v50 = vand.u32 4294901760, %v8233_v12 }
 0x57c   :  { %6917 = vmatprep.subr.bf16.mxu0 %v6916_v13  ;;  %v3597_v29 = vsub.f32 %v8210_v34, %v3596_v16 }
 0x57d   :  { %v6928_v18 = vpack.c.bf16 %v3591_v9, %v3584_v42  ;;  %v3618_v62 = vsub.f32 %v8233_v12, %v3617_v50  ;;  %v6940_v42 = vpack.c.bf16 %v8101_v27, %v8099_v47  ;;  %v6944_v9 = vpack.c.bf16 %v8126_v49, %v8124_v41 }
 0x57e   :  { %v7024_v49 = vpack.c.bf16 %v3589_v30, %v3582_v53 }
 0x57f   :  { %6919 = vmatpush3.bf16.msra.mxu0 %v6916_v13  ;;  %v3598_v13 = vand.u32 4294901760, %v3597_v29  ;;  %v3619_v5 = vand.u32 4294901760, %v3618_v62  ;;  %v6956_v29 = vpack.c.bf16 %v8175_v6, %v8173_v38 }
 0x580   :  { %6921 = vmatprep.subr.bf16.mxu0 %v6920_v61 }
 0x581   :  { %v6932_v35 = vpack.c.bf16 %v3605_v19, %v3598_v13  ;;  %v8437_v19 = vand.u32 4294901760, %v8124_v41  ;;  %v8442_v41 = vand.u32 4294901760, %v8152_v14 }
 0x583   :  { %6923 = vmatpush3.bf16.msra.mxu0 %v6920_v61  ;;  %v6936_v61 = vpack.c.bf16 %v3619_v5, %v3612_v63  ;;  %v6952_v5 = vpack.c.bf16 %v8152_v14, %v8150_v54  ;;  %v7008_v62 = vpack.c.bf16 %v8438_v15, %v8437_v19  ;;  %v8441_v63 = vand.u32 4294901760, %v8150_v54 }
 0x584   :  { %6925 = vmatprep.subr.bf16.mxu0 %v6924_v22  ;;  %v8443_v14 = vand.u32 4294901760, %v8215_v20 }
 0x587   :  { %6927 = vmatpush3.bf16.msra.mxu0 %v6924_v22  ;;  %v6948_v22 = vpack.c.bf16 %v8148_v26, %v8146_v23 }
 0x588   :  { %6929 = vmatprep.subr.bf16.mxu0 %v6928_v18 }
 0x58b   :  { %6931 = vmatpush3.bf16.msra.mxu0 %v6928_v18  ;;  %v6968_v18 = vpack.c.bf16 %v8233_v12, %v8228_v39 }
 0x58c   :  { %6933 = vmatprep.subr.bf16.mxu0 %v6932_v35 }
 0x58f   :  { %6935 = vmatpush3.bf16.msra.mxu0 %v6932_v35  ;;  %v8439_v35 = vand.u32 4294901760, %v8146_v23  ;;  %v7028_v23 = vpack.c.bf16 %v8443_v14, %v3596_v16 }
 0x590   :  { %6937 = vmatprep.subr.bf16.mxu0 %v6936_v61 }
 0x593   :  { %6939 = vmatpush3.bf16.msra.mxu0 %v6936_v61  ;;  %v7016_v61 = vpack.c.bf16 %v8442_v41, %v8441_v63 }
 0x594   :  { %6941 = vmatprep.subr.bf16.mxu0 %v6940_v42 }
 0x596   :  { %6182 = vmatmul.mubr.f32.vlgmr.msra.gmra.mrb[6].mxu0 %v7989_v24 }
 0x597   :  { %6943 = vmatpush3.bf16.msra.mxu0 %v6940_v42  ;;  %6216 = vmatprep.mubr.f32.mxu0 %v7997_v17  ;;  %v6964_v17 = vpack.c.bf16 %v8215_v20, %v8210_v34 }
 0x598   :  { %6945 = vmatprep.subr.bf16.mxu0 %v6944_v9 }
 0x59b   :  { %6947 = vmatpush3.bf16.msra.mxu0 %v6944_v9 }
 0x59c   :  { %6949 = vmatprep.subr.bf16.mxu0 %v6948_v22 }
 0x59f   :  { %6951 = vmatpush3.bf16.msra.mxu0 %v6948_v22 }
 0x5a0   :  { %6953 = vmatprep.subr.bf16.mxu0 %v6952_v5 }
 0x5a3   :  { %6955 = vmatpush3.bf16.msra.mxu0 %v6952_v5 }
 0x5a4   :  { %6957 = vmatprep.subr.bf16.mxu0 %v6956_v29 }
 0x5a7   :  { %6959 = vmatpush3.bf16.msra.mxu0 %v6956_v29 }
 0x5a8   :  { %6961 = vmatprep.subr.bf16.mxu0 %v6960_v48 }
 0x5ab   :  { %6963 = vmatpush3.bf16.msra.mxu0 %v6960_v48 }
 0x5ac   :  { %6965 = vmatprep.subr.bf16.mxu0 %v6964_v17 }
 0x5af   :  { %6967 = vmatpush3.bf16.msra.mxu0 %v6964_v17 }
 0x5b0   :  { %6969 = vmatprep.subr.bf16.mxu0 %v6968_v18 }
 0x5b3   :  { %6971 = vmatpush3.bf16.msra.mxu0 %v6968_v18 }
 0x5b4   :  { %6973 = vmatprep.subr.bf16.mxu0 %v8041_v3 }
 0x5b6   :  { %6217 = vmatmul.mubr.f32.vlgmr.msra.gmra.mrb[6].mxu0 %v7994_v10  ;;  %v8435_v10 = vand.u32 4294901760, %v8099_v47  ;;  %v8440_v47 = vand.u32 4294901760, %v8148_v26  ;;  %v7032_v26 = vpack.c.bf16 %v3617_v50, %v3610_v11 }
 0x5b7   :  { %6975 = vmatpush3.bf16.msra.mxu0 %v8041_v3  ;;  %6251 = vmatprep.mubr.f32.mxu0 %v8005_v55  ;;  %v8436_v55 = vand.u32 4294901760, %v8101_v27 }
 0x5b8   :  { %6977 = vmatprep.subr.bf16.mxu0 %v8059_v25  ;;  %v7012_v27 = vpack.c.bf16 %v8440_v47, %v8439_v35 }
 0x5b9   :  { %v7004_v13 = vpack.c.bf16 %v8436_v55, %v8435_v10 }
 0x5bb   :  { %6979 = vmatpush3.bf16.msra.mxu0 %v8059_v25 }
 0x5bc   :  { %6981 = vmatprep.subr.bf16.mxu0 %v8070_v59 }
 0x5bf   :  { %6983 = vmatpush3.bf16.msra.mxu0 %v8070_v59 }
 0x5c0   :  { %6985 = vmatprep.subr.bf16.mxu0 %v8080_v37 }
 0x5c3   :  { %6987 = vmatpush3.bf16.msra.mxu0 %v8080_v37 }
 0x5c4   :  { %6989 = vmatprep.subr.bf16.mxu0 %v8104_v45 }
 0x5c7   :  { %6991 = vmatpush3.bf16.msra.mxu0 %v8104_v45 }
 0x5c8   :  { %6993 = vmatprep.subr.bf16.mxu0 %v8112_v2 }
 0x5cb   :  { %6995 = vmatpush3.bf16.msra.mxu0 %v8112_v2 }
 0x5cc   :  { %6997 = vmatprep.subr.bf16.mxu0 %v8132_v7 }
 0x5cf   :  { %6999 = vmatpush3.bf16.msra.mxu0 %v8132_v7 }
 0x5d0   :  { %7001 = vmatprep.subr.bf16.mxu0 %v8159_v1 }
 0x5d3   :  { %7003 = vmatpush3.bf16.msra.mxu0 %v8159_v1 }
 0x5d4   :  { %7005 = vmatprep.subr.bf16.mxu0 %v7004_v13 }
 0x5d6   :  { %6252 = vmatmul.mubr.f32.vlgmr.msra.gmra.mrb[6].mxu0 %v8002_v43  ;;  %v7020_v43 = vpack.c.bf16 %v3575_v57, %v3568_v51 }
 0x5d7   :  { %7007 = vmatpush3.bf16.msra.mxu0 %v7004_v13  ;;  %6286 = vmatprep.mubr.f32.mxu0 %v7991_v4 }
 0x5d8   :  { %7009 = vmatprep.subr.bf16.mxu0 %v7008_v62 }
 0x5db   :  { %7011 = vmatpush3.bf16.msra.mxu0 %v7008_v62 }
 0x5dc   :  { %7013 = vmatprep.subr.bf16.mxu0 %v7012_v27 }
 0x5df   :  { %7015 = vmatpush3.bf16.msra.mxu0 %v7012_v27 }
 0x5e0   :  { %7017 = vmatprep.subr.bf16.mxu0 %v7016_v61 }
 0x5e3   :  { %7019 = vmatpush3.bf16.msra.mxu0 %v7016_v61 }
 0x5e4   :  { %7021 = vmatprep.subr.bf16.mxu0 %v7020_v43 }
 0x5e7   :  { %7023 = vmatpush3.bf16.msra.mxu0 %v7020_v43 }
 0x5e8   :  { %7025 = vmatprep.subr.bf16.mxu0 %v7024_v49 }
 0x5eb   :  { %7027 = vmatpush3.bf16.msra.mxu0 %v7024_v49 }
 0x5ec   :  { %7029 = vmatprep.subr.bf16.mxu0 %v7028_v23 }
 0x5ef   :  { %7031 = vmatpush3.bf16.msra.mxu0 %v7028_v23 }
 0x5f0   :  { %7033 = vmatprep.subr.bf16.mxu0 %v7032_v26 }
 0x5f3   :  { %7035 = vmatpush3.bf16.msra.mxu0 %v7032_v26 }
 0x5f4   :  { %7037 = vmatprep.subr.bf16.mxu0 %v8041_v3 }
 0x5f6   :  { %6287 = vmatmul.mubr.f32.vlgmr.msra.gmra.mrb[6].mxu0 %v7989_v24 }
 0x5f7   :  { %7039 = vmatpush3.bf16.msra.mxu0 %v8041_v3  ;;  %6321 = vmatprep.mubr.f32.mxu0 %v7991_v4 }
 0x5f8   :  { %7041 = vmatprep.subr.bf16.mxu0 %v8059_v25 }
 0x5fb   :  { %7043 = vmatpush3.bf16.msra.mxu0 %v8059_v25 }
 0x5fc   :  { %7045 = vmatprep.subr.bf16.mxu0 %v8070_v59 }
 0x5ff   :  { %7047 = vmatpush3.bf16.msra.mxu0 %v8070_v59 }
 0x600   :  { %7049 = vmatprep.subr.bf16.mxu0 %v8080_v37 }
 0x603   :  { %7051 = vmatpush3.bf16.msra.mxu0 %v8080_v37 }
 0x604   :  { %7053 = vmatprep.subr.bf16.mxu0 %v8104_v45 }
 0x607   :  { %7055 = vmatpush3.bf16.msra.mxu0 %v8104_v45 }
 0x608   :  { %7057 = vmatprep.subr.bf16.mxu0 %v8112_v2 }
 0x60b   :  { %7059 = vmatpush3.bf16.msra.mxu0 %v8112_v2 }
 0x60c   :  { %7061 = vmatprep.subr.bf16.mxu0 %v8132_v7 }
 0x60f   :  { %7063 = vmatpush3.bf16.msra.mxu0 %v8132_v7 }
 0x610   :  { %7065 = vmatprep.subr.bf16.mxu0 %v8159_v1 }
 0x613   :  { %7067 = vmatpush3.bf16.msra.mxu0 %v8159_v1 }
 0x616   :  { %6322 = vmatmul.mubr.f32.vlgmr.msra.gmra.mrb[6].mxu0 %v7989_v24 }
 0x629   :  { %v3387_v4 = vpop.f32.mrb[4].mxu0 }
 0x62a   :  { %3391 = vst [vmem:[%s8391_s10] sm:$0xff] %v3387_v4  ;;  %v6113_v3 = vpop.f32.mrb[5].mxu0 }
 0x6e9   :  { %v6323_v25 = vpop.f32.mrb[6].mxu0 }
 0x6ea   :  { %v4103_v59 = vand.u32 4294901760, %v6323_v25  ;;  %v4082_v37 = vpop.f32.mrb[7].mxu0 }
 0x6eb   :  { %v4100_v45 = vand.u32 4294901760, %v4082_v37 }
 0x6ec   :  { %v4195_v2 = vsub.f32 %v6323_v25, %v4103_v59 }
 0x6ed   :  { %v7068_v54 = vpack.c.bf16 %v4103_v59, %v4100_v45  ;;  %v4188_v38 = vsub.f32 %v4082_v37, %v4100_v45 }
 0x6ee   :  { %v4196_v7 = vand.u32 4294901760, %v4195_v2 }
 0x6ef   :  { %v4189_v6 = vand.u32 4294901760, %v4188_v38  ;;  %7069 = vmatprep.subr.bf16.mxu1 %v7068_v54  ;;  %v7076_v51 = vpack.c.bf16 %v4195_v2, %v4188_v38 }
 0x6f0   :  { %v4197_v1 = vsub.f32 %v4195_v2, %v4196_v7  ;;  %7071 = vmatpush3.bf16.msra.mxu1 %v7068_v54 }
 0x6f1   :  { %v4190_v24 = vsub.f32 %v4188_v38, %v4189_v6  ;;  %v7084_v57 = vpack.c.bf16 %v4196_v7, %v4189_v6 }
 0x6f2   :  { %v4198_v0 = vand.u32 4294901760, %v4197_v1 }
 0x6f3   :  { %v4191_v56 = vand.u32 4294901760, %v4190_v24  ;;  %6329 = vmatmul.mubr.f32.vlgmr.msra.gmra.mrb[10].mxu1 %v7584_v44 }
 0x6f4   :  { %6335 = vmatprep.mubr.f32.mxu1 %v7556_v28 }
 0x6f5   :  { %v7072_v53 = vpack.c.bf16 %v4198_v0, %v4191_v56 }
 0x6f7   :  { %7073 = vmatprep.subr.bf16.mxu1 %v7072_v53 }
 0x6f8   :  { %7075 = vmatpush3.bf16.msra.mxu1 %v7072_v53 }
 0x6f9   :  { %7077 = vmatprep.subr.bf16.mxu1 %v7076_v51 }
 0x6fb   :  { %6336 = vmatmul.mubr.f32.vlgmr.msra.gmra.mrb[10].mxu1 %v7574_v52 }
 0x6fc   :  { %7079 = vmatpush3.bf16.msra.mxu1 %v7076_v51  ;;  %6342 = vmatprep.mubr.f32.mxu1 %v7559_v31  ;;  %v5075_v31 = vld [vmem:[%s8392_s8] ss:$0 sm:$0xff] }
 0x6fd   :  { %7081 = vmatprep.subr.bf16.mxu1 %v7068_v54 }
 0x703   :  { %6343 = vmatmul.mubr.f32.vlgmr.msra.gmra.mrb[10].mxu1 %v7577_v58 }
 0x704   :  { %7083 = vmatpush3.bf16.msra.mxu1 %v7068_v54  ;;  %6349 = vmatprep.mubr.f32.mxu1 %v7562_v32 }
 0x705   :  { %7085 = vmatprep.subr.bf16.mxu1 %v7084_v57 }
 0x70b   :  { %6350 = vmatmul.mubr.f32.vlgmr.msra.gmra.mrb[10].mxu1 %v7580_v60 }
 0x70c   :  { %7087 = vmatpush3.bf16.msra.mxu1 %v7084_v57  ;;  %6356 = vmatprep.mubr.f32.mxu1 %v7556_v28 }
 0x70d   :  { %7089 = vmatprep.subr.bf16.mxu1 %v7068_v54 }
 0x713   :  { %6357 = vmatmul.mubr.f32.vlgmr.msra.gmra.mrb[10].mxu1 %v7574_v52 }
 0x714   :  { %7091 = vmatpush3.bf16.msra.mxu1 %v7068_v54  ;;  %6363 = vmatprep.mubr.f32.mxu1 %v7556_v28 }
 0x715   :  { %7092 = vmatprep.subr.bf16.mxu1 %v8430_v21 }
 0x71b   :  { %6364 = vmatmul.mubr.f32.vlgmr.msra.gmra.mrb[10].mxu1 %v7574_v52 }
 0x71c   :  { %6370 = vmatprep.mubr.msk.f32.mxu1 %vm7210_vm1, %v8431_v36 }
 0x7ee   :  { %v6365_v32 = vpop.f32.mrb[10].mxu1 }
 0x7ef   :  { %v7118_v58 = vadd.f32 %v6365_v32, %v5075_v31  ;;  %v4591_v60 = vpop.f32.mrb[11].mxu1 }
 0x7f0   :  { %v7119_v44 = vadd.f32 %v5075_v31, %v4591_v60 }
 0x7f1   :  { %v4605_v30 = vand.u32 4294901760, %v7118_v58 }
 0x7f2   :  { %v4602_v34 = vand.u32 4294901760, %v7119_v44 }
 0x7f3   :  { %v4687_v20 = vsub.f32 %v7118_v58, %v4605_v30 }
 0x7f4   :  { %v7093_v16 = vpack.c.bf16 %v4605_v30, %v4602_v34  ;;  %v4680_v28 = vsub.f32 %v7119_v44, %v4602_v34 }
 0x7f5   :  { %v4688_v39 = vand.u32 4294901760, %v4687_v20 }
 0x7f6   :  { %v4681_v12 = vand.u32 4294901760, %v4680_v28  ;;  %v7099_v11 = vpack.c.bf16 %v4687_v20, %v4680_v28  ;;  %7094 = vmatpush3.bf16.msra.mxu1 %v7093_v16 }
 0x7f7   :  { %v4689_v52 = vsub.f32 %v4687_v20, %v4688_v39  ;;  %7095 = vmatprep.subr.bf16.mxu1 %v8430_v21 }
 0x7f8   :  { %v4682_v50 = vsub.f32 %v4680_v28, %v4681_v12  ;;  %v7105_v42 = vpack.c.bf16 %v4688_v39, %v4681_v12 }
 0x7f9   :  { %v4690_v9 = vand.u32 4294901760, %v4689_v52  ;;  %6371 = vmatmul.mubr.f32.vlgmr.msra.gmra.mrb[12].mxu1 %v7632_v8 }
 0x7fa   :  { %v4683_v22 = vand.u32 4294901760, %v4682_v50  ;;  %6377 = vmatprep.mubr.msk.f32.mxu1 %vm7210_vm1, %v8431_v36 }
 0x7fc   :  { %v7096_v5 = vpack.c.bf16 %v4690_v9, %v4683_v22 }
 0x7fe   :  { %7097 = vmatpush3.bf16.msra.mxu1 %v7096_v5 }
 0x7ff   :  { %7098 = vmatprep.subr.bf16.mxu1 %v8430_v21 }
 0x801   :  { %6378 = vmatmul.mubr.f32.vlgmr.msra.gmra.mrb[12].mxu1 %v7604_v33 }
 0x802   :  { %7100 = vmatpush3.bf16.msra.mxu1 %v7099_v11  ;;  %6384 = vmatprep.mubr.msk.f32.mxu1 %vm7210_vm1, %v8431_v36 }
 0x803   :  { %7101 = vmatprep.subr.bf16.mxu1 %v8430_v21 }
 0x809   :  { %6385 = vmatmul.mubr.f32.vlgmr.msra.gmra.mrb[12].mxu1 %v7607_v46 }
 0x80a   :  { %7103 = vmatpush3.bf16.msra.mxu1 %v7093_v16  ;;  %6391 = vmatprep.mubr.msk.f32.mxu1 %vm7210_vm1, %v8431_v36 }
 0x80b   :  { %7104 = vmatprep.subr.bf16.mxu1 %v8430_v21 }
 0x811   :  { %6392 = vmatmul.mubr.f32.vlgmr.msra.gmra.mrb[12].mxu1 %v7613_v40 }
 0x812   :  { %7106 = vmatpush3.bf16.msra.mxu1 %v7105_v42  ;;  %6398 = vmatprep.mubr.msk.f32.mxu1 %vm7210_vm1, %v8431_v36 }
 0x813   :  { %7107 = vmatprep.subr.bf16.mxu1 %v8430_v21 }
 0x819   :  { %6399 = vmatmul.mubr.f32.vlgmr.msra.gmra.mrb[12].mxu1 %v7604_v33 }
 0x81a   :  { %7109 = vmatpush3.bf16.msra.mxu1 %v7093_v16  ;;  %6405 = vmatprep.mubr.msk.f32.mxu1 %vm7210_vm1, %v8431_v36 }
 0x821   :  { %6406 = vmatmul.mubr.f32.vlgmr.msra.gmra.mrb[12].mxu1 %v7604_v33 }
 0x8f4   :  { %v5056_v46 = vpop.f32.mrb[12].mxu1 }
 0x8f5   :  { %5060 = vst [vmem:[%s8393_s11] sm:$0xff] %v5056_v46  ;;  %v6407_v40 = vpop.f32.mrb[13].mxu1 }

</bundles_post_ra>
